<compile_context>
chip_gen: v7x
topology: tpu7x:2x2x1
jax: 0.10.0
libtpu: 0.0.40
codegen_flags: <defaults>
</compile_context>

<pallas_src>
import functools

import jax
import jax.numpy as jnp
from jax.experimental import pallas as pl
from jax.experimental.pallas import tpu as pltpu


def _round_up(a, b):
    return (a + b - 1) // b * b


def _basic_unit_kernel(x_hbm, w_ref, b_ref, o_ref, buf_a, buf_b, buf_x, sem,
                       *, H, W, Hb, halo, n_resblocks):
    """One (batch, H-tile) step of BasicUnit, fully fused in VMEM.

    x_hbm : (N, C, Hpad*W) HBM ref (ANY); Hpad = H + 2*halo (wrapper-padded)
    w_ref : (2R, C, 9C)    conv weights, columns ordered (kx, ky, ci)
    b_ref : (2R, C, 1)     conv biases
    o_ref : (1, C, Hb*W)   output tile (valid center rows of this window)
    buf_a, buf_b : (C, Hext*W + 2*PAD) zero-haloed ping-pong activation buffers
    buf_x : (C, Hext*W)    copy of the input window (unit residual)
    sem   : DMA semaphore
    """
    b = pl.program_id(0)
    h = pl.program_id(1)

    Hext = Hb + 2 * halo
    EW = Hext * W                          # lanes in the extended row window
    PAD = (buf_a.shape[1] - EW) // 2       # 128-aligned lane halo (>= W + 1)
    C = w_ref.shape[1]

    # Zero the lane halos: they implement the dy = +-1 (top/bottom) zero
    # padding for free.  Done every step (not @pl.when(first step)) so it
    # stays correct when the "parallel" grid is split across TensorCores with
    # per-core scratch; the center is never zeroed (fully overwritten).
    zeros = jnp.zeros((C, PAD), jnp.float32)
    buf_a[:, :PAD] = zeros
    buf_a[:, PAD + EW:] = zeros
    buf_b[:, :PAD] = zeros
    buf_b[:, PAD + EW:] = zeros

    # DMA this step's haloed row window of x into buf_a's (aligned) center.
    start = (h * Hb) * W
    cp = pltpu.make_async_copy(x_hbm.at[b, :, pl.ds(start, EW)],
                               buf_a.at[:, pl.ds(PAD, EW)], sem)
    cp.start()
    cp.wait()
    buf_x[...] = buf_a[:, PAD:PAD + EW]    # keep x for the unit residual

    # Per-lane masks: column-in-row kills the left/right image-border wrap for
    # the dx = -1 / +1 tap groups (one select per group, not one per tap).
    col = jax.lax.broadcasted_iota(jnp.int32, (1, EW), 1) % W
    mask_l = col >= 1                      # valid lanes when dx == -1
    mask_r = col <= W - 2                  # valid lanes when dx == +1
    if halo > 0:
        # Rows of the extended window that lie outside the real image must be
        # forced back to zero after every conv, replicating each conv's own
        # zero padding at the true image top/bottom boundary.
        row = jax.lax.broadcasted_iota(jnp.int32, (1, EW), 1) // W
        prow = h * Hb + row                # row index in the padded image
        in_img = jnp.logical_and(prow >= halo, prow < halo + H)

    def conv3x3(src, conv_idx):
        # src: padded buffer holding the conv input in its center.
        # Returns the (C, EW) f32 conv output (bias included).
        def tap(dy, dx):
            s = dy * W + dx
            return src[:, PAD + s:PAD + s + EW]
        left = jnp.concatenate([tap(-1, -1), tap(0, -1), tap(1, -1)], axis=0)
        mid = jnp.concatenate([tap(-1, 0), tap(0, 0), tap(1, 0)], axis=0)
        right = jnp.concatenate([tap(-1, 1), tap(0, 1), tap(1, 1)], axis=0)
        rhs = jnp.concatenate([jnp.where(mask_l, left, 0.0),
                               mid,
                               jnp.where(mask_r, right, 0.0)], axis=0)
        # Single (C, 9C) @ (9C, EW) MXU matmul, f32 accumulation.
        return jnp.dot(w_ref[conv_idx], rhs,
                       preferred_element_type=jnp.float32) + b_ref[conv_idx]

    def clamp_rows(v):
        return jnp.where(in_img, v, 0.0) if halo > 0 else v

    for r in range(n_resblocks):                       # BasicModule chain
        t1 = clamp_rows(jnp.maximum(conv3x3(buf_a, 2 * r), 0.0))   # conv1+ReLU
        buf_b[:, PAD:PAD + EW] = t1
        res = clamp_rows(conv3x3(buf_b, 2 * r + 1))                # conv2
        buf_a[:, PAD:PAD + EW] = buf_a[:, PAD:PAD + EW] + res      # + residual

    # BasicUnit residual; write only the Hb valid center rows of the window.
    lo = halo * W
    o_ref[0] = (buf_x[:, lo:lo + Hb * W]
                + buf_a[:, PAD + lo:PAD + lo + Hb * W]).astype(o_ref.dtype)


def _vmem_bytes(C, W, Hb, halo, PAD, n_convs):
    """Rough f32 VMEM footprint of one grid step (used to pick the H tile)."""
    EW = (Hb + 2 * halo) * W
    ping_pong = 2 * C * (EW + 2 * PAD)      # buf_a + buf_b
    keep_x = C * EW                         # buf_x
    stacked = 2 * 9 * C * EW                # (9C, EW) matmul operand + temps
    results = 2 * C * EW                    # conv output / residual temps
    weights = 2 * n_convs * C * 9 * C       # (double-buffered) weight block
    out_blk = 2 * C * Hb * W                # double-buffered output block
    return 4 * (ping_pong + keep_x + stacked + results + weights + out_blk)


def basic_unit(x_nchw, conv_weights, conv_biases, *,
               vmem_budget_bytes=36 * 1024 * 1024, tile_rows=None):
    """BasicUnit forward.

    x_nchw      : (N, C, H, W) float32  (PyTorch NCHW)
    conv_weights: list of 2*n_resblocks PyTorch-layout (C, C, 3, 3) arrays,
                  ordered [blk0.conv1, blk0.conv2, blk1.conv1, blk1.conv2, ...]
    conv_biases : list of 2*n_resblocks (C,) arrays (same order)
    tile_rows   : optional explicit H-tile height (forces the halo path).
    """
    N, C, H, W = x_nchw.shape
    n_convs = len(conv_weights)
    assert n_convs % 2 == 0 and len(conv_biases) == n_convs
    n_resblocks = n_convs // 2

    PAD = _round_up(W + 1, 128)   # lane-aligned halo -> unmasked center stores

    # ---- pick the H-tile height from the VMEM budget -----------------------
    if tile_rows is not None and tile_rows < H:
        assert H % tile_rows == 0 and (tile_rows * W) % 128 == 0, \
            "tile_rows must divide H and give 128-lane-aligned output tiles"
        Hb, halo = tile_rows, 2 * n_resblocks
    elif _vmem_bytes(C, W, H, 0, PAD, n_convs) <= vmem_budget_bytes:
        Hb, halo = H, 0                      # whole image per step, no halo
    else:
        Hb, halo = H, 0                      # fallback: single oversized tile
        rf = 2 * n_resblocks                 # receptive field of the unit
        for d in range(H - 1, 0, -1):
            if (H % d == 0 and (d * W) % 128 == 0
                    and _vmem_bytes(C, W, d, rf, PAD, n_convs)
                    <= vmem_budget_bytes):
                Hb, halo = d, rf
                break
    num_h = H // Hb
    Hext = Hb + 2 * halo
    EW = Hext * W

    x = x_nchw.astype(jnp.float32)
    if halo > 0:
        # Zero-pad H by the unit's receptive field so every tile's haloed row
        # window is in range (boundary tiles read true zero padding).
        x = jnp.pad(x, ((0, 0), (0, 0), (halo, halo), (0, 0)))
    Hpad = H + 2 * halo
    x = x.reshape(N, C, Hpad * W)            # NCHW is (N,C,H*W)-contiguous

    # (Cout, Cin, 3, 3) -> (Cout, kx, ky, Cin) -> (C, 9C): lane-dense weights
    # whose column order matches the stacked (dx-group, dy, ci) RHS.
    wk = jnp.stack([jnp.transpose(w, (0, 3, 2, 1)).reshape(C, 9 * C)
                    for w in conv_weights], axis=0)               # (2R, C, 9C)
    bk = jnp.stack([b.reshape(C, 1) for b in conv_biases], axis=0)  # (2R, C, 1)

    kernel = functools.partial(_basic_unit_kernel, H=H, W=W, Hb=Hb, halo=halo,
                               n_resblocks=n_resblocks)

    est = _vmem_bytes(C, W, Hb, halo, PAD, n_convs)
    vmem_limit = min(max(int(1.5 * est), 32 * 1024 * 1024), 64 * 1024 * 1024)
    if est > vmem_limit:                     # oversized tile (v5e/v6e only)
        vmem_limit = int(1.2 * est)

    flops = 2 * N * num_h * n_convs * C * 9 * C * EW
    bytes_accessed = 4 * (N * num_h * C * EW + N * C * H * W
                          + int(wk.size) + int(bk.size))

    out = pl.pallas_call(
        kernel,
        out_shape=jax.ShapeDtypeStruct((N, C, H * W), jnp.float32),
        grid_spec=pltpu.PrefetchScalarGridSpec(
            num_scalar_prefetch=0,
            grid=(N, num_h),
            in_specs=[
                pl.BlockSpec(memory_space=pl.ANY),                    # x (HBM)
                pl.BlockSpec((n_convs, C, 9 * C), lambda b, h: (0, 0, 0)),
                pl.BlockSpec((n_convs, C, 1), lambda b, h: (0, 0, 0)),
            ],
            out_specs=pl.BlockSpec((1, C, Hb * W), lambda b, h: (b, 0, h)),
            scratch_shapes=[
                pltpu.VMEM((C, EW + 2 * PAD), jnp.float32),   # buf_a (u)
                pltpu.VMEM((C, EW + 2 * PAD), jnp.float32),   # buf_b (t1)
                pltpu.VMEM((C, EW), jnp.float32),             # buf_x
                pltpu.SemaphoreType.DMA,
            ]),
        compiler_params=pltpu.CompilerParams(
            dimension_semantics=("parallel", "parallel"),
            vmem_limit_bytes=vmem_limit),
        cost_estimate=pl.CostEstimate(
            flops=flops, transcendentals=0, bytes_accessed=bytes_accessed),
    )(x, wk, bk)

    return out.reshape(N, C, H, W)


# ----------------------------- reference ------------------------------------

def _conv3x3_ref(x, w, b):
    out = jax.lax.conv_general_dilated(
        x, w, window_strides=(1, 1), padding=((1, 1), (1, 1)),
        dimension_numbers=("NCHW", "OIHW", "NCHW"),
        precision=jax.lax.Precision.HIGHEST)
    return out + b[None, :, None, None]


def _reference(x, conv_weights, conv_biases):
    u = x
    for r in range(len(conv_weights) // 2):
        t = jnp.maximum(
            _conv3x3_ref(u, conv_weights[2 * r], conv_biases[2 * r]), 0.0)
        u = u + _conv3x3_ref(t, conv_weights[2 * r + 1], conv_biases[2 * r + 1])
    return x + u


if __name__ == "__main__":
    # Small shapes consistent with the module: n_feats=4, n_resblocks=2.
    N, C, H, W = 2, 4, 16, 16
    n_resblocks = 2
    n_convs = 2 * n_resblocks

    key = jax.random.PRNGKey(0)
    keys = jax.random.split(key, 1 + 2 * n_convs)
    x = jax.random.normal(keys[0], (N, C, H, W), dtype=jnp.float32)

    conv_weights = [
        jax.random.normal(keys[1 + 2 * i], (C, C, 3, 3), dtype=jnp.float32) * 0.1
        for i in range(n_convs)]
    conv_biases = [
        jax.random.normal(keys[2 + 2 * i], (C,), dtype=jnp.float32) * 0.1
        for i in range(n_convs)]

    ref = _reference(x, conv_weights, conv_biases)

    # Path 1: whole image per grid step (halo = 0).
    out = jax.block_until_ready(basic_unit(x, conv_weights, conv_biases))
    assert out.shape == (N, C, H, W)
    assert jnp.allclose(out, ref, atol=5e-4, rtol=5e-4), \
        float(jnp.max(jnp.abs(out - ref)))

    # Path 2: H-tiled with a 2R-row recompute halo (the large-image path).
    out_t = jax.block_until_ready(
        basic_unit(x, conv_weights, conv_biases, tile_rows=8))
    assert jnp.allclose(out_t, ref, atol=5e-4, rtol=5e-4), \
        float(jnp.max(jnp.abs(out_t - ref)))

    print("KERNEL_OK")
</pallas_src>

<mosaic_0001>
module attributes {stable_mosaic.version = 11 : i64} {
  func.func @_basic_unit_kernel(%arg0: i32, %arg1: i32, %arg2: memref<2x4x256xf32, #tpu.memory_space<any>>, %arg3: memref<4x4x36xf32, #tpu.memory_space<vmem>>, %arg4: memref<4x4x1xf32, #tpu.memory_space<vmem>>, %arg5: memref<1x4x256xf32, #tpu.memory_space<vmem>>, %arg6: memref<4x512xf32, #tpu.memory_space<vmem>>, %arg7: memref<4x512xf32, #tpu.memory_space<vmem>>, %arg8: memref<4x256xf32, #tpu.memory_space<vmem>>, %arg9: memref<!tpu.dma_semaphore, #tpu.memory_space<semaphore_mem>>) attributes {dimension_semantics = [#tpu.dimension_semantics<parallel>, #tpu.dimension_semantics<parallel>], iteration_bounds = array<i64: 2, 1>, scalar_prefetch = 0 : i64, scratch_operands = 4 : i64, tpu.core_type = #tpu.core_type<tc>, window_params = [{}, {pipeline_mode = #tpu.pipeline_mode<synchronous>, transform_indices = @transform_1, window_bounds = array<i64: 4, 4, 36>}, {pipeline_mode = #tpu.pipeline_mode<synchronous>, transform_indices = @transform_2, window_bounds = array<i64: 4, 4, 1>}, {transform_indices = @transform_3, window_bounds = array<i64: 1, 4, 256>}]} {
    %cst = arith.constant 0.000000e+00 : f32
    %0 = vector.broadcast %cst : f32 to vector<4x128xf32>
    %c0 = arith.constant 0 : index
    %c0_0 = arith.constant 0 : index
    %1 = vector.load %arg6[%c0, %c0_0] : memref<4x512xf32, #tpu.memory_space<vmem>>, vector<4x128xf32>
    tpu.vector_store %arg6[%c0, %c0_0], %0 {strides = array<i32>} : memref<4x512xf32, #tpu.memory_space<vmem>>, vector<4x128xf32>,
    %c0_1 = arith.constant 0 : index
    %c384 = arith.constant 384 : index
    %2 = vector.load %arg6[%c0_1, %c384] : memref<4x512xf32, #tpu.memory_space<vmem>>, vector<4x128xf32>
    tpu.vector_store %arg6[%c0_1, %c384], %0 {strides = array<i32>} : memref<4x512xf32, #tpu.memory_space<vmem>>, vector<4x128xf32>,
    %c0_2 = arith.constant 0 : index
    %c0_3 = arith.constant 0 : index
    %3 = vector.load %arg7[%c0_2, %c0_3] : memref<4x512xf32, #tpu.memory_space<vmem>>, vector<4x128xf32>
    tpu.vector_store %arg7[%c0_2, %c0_3], %0 {strides = array<i32>} : memref<4x512xf32, #tpu.memory_space<vmem>>, vector<4x128xf32>,
    %c0_4 = arith.constant 0 : index
    %c384_5 = arith.constant 384 : index
    %4 = vector.load %arg7[%c0_4, %c384_5] : memref<4x512xf32, #tpu.memory_space<vmem>>, vector<4x128xf32>
    tpu.vector_store %arg7[%c0_4, %c384_5], %0 {strides = array<i32>} : memref<4x512xf32, #tpu.memory_space<vmem>>, vector<4x128xf32>,
    %c16_i32 = arith.constant 16 : i32
    %5 = arith.muli %arg1, %c16_i32 : i32
    %c16_i32_6 = arith.constant 16 : i32
    %6 = arith.muli %5, %c16_i32_6 : i32
    %c0_i32 = arith.constant 0 : i32
    %7 = tpu.memref_slice %arg2[%arg0, %c0_i32, %6] : memref<2x4x256xf32, #tpu.memory_space<any>> -> memref<1x4x256xf32, #tpu.memory_space<any>>
    %8 = tpu.memref_squeeze %7 : memref<1x4x256xf32, #tpu.memory_space<any>> -> memref<4x256xf32, #tpu.memory_space<any>>
    %c0_i32_7 = arith.constant 0 : i32
    %c128_i32 = arith.constant 128 : i32
    %9 = tpu.memref_slice %arg6[%c0_i32_7, %c128_i32] : memref<4x512xf32, #tpu.memory_space<vmem>> -> memref<4x256xf32, #tpu.memory_space<vmem>>
    tpu.enqueue_dma source(%8 : memref<4x256xf32, #tpu.memory_space<any>>) target(%9 : memref<4x256xf32, #tpu.memory_space<vmem>>) target_semaphore(%arg9 : memref<!tpu.dma_semaphore, #tpu.memory_space<semaphore_mem>>)
    %c0_i32_8 = arith.constant 0 : i32
    %10 = tpu.memref_slice %arg2[%arg0, %c0_i32_8, %6] : memref<2x4x256xf32, #tpu.memory_space<any>> -> memref<1x4x256xf32, #tpu.memory_space<any>>
    %11 = tpu.memref_squeeze %10 : memref<1x4x256xf32, #tpu.memory_space<any>> -> memref<4x256xf32, #tpu.memory_space<any>>
    %c0_i32_9 = arith.constant 0 : i32
    %c128_i32_10 = arith.constant 128 : i32
    %12 = tpu.memref_slice %arg6[%c0_i32_9, %c128_i32_10] : memref<4x512xf32, #tpu.memory_space<vmem>> -> memref<4x256xf32, #tpu.memory_space<vmem>>
    tpu.wait_dma2 semaphore(%arg9 : memref<!tpu.dma_semaphore, #tpu.memory_space<semaphore_mem>>) src(%11 : memref<4x256xf32, #tpu.memory_space<any>>) dst(%12 : memref<4x256xf32, #tpu.memory_space<vmem>>)
    %c0_11 = arith.constant 0 : index
    %c128 = arith.constant 128 : index
    %13 = vector.load %arg6[%c0_11, %c128] : memref<4x512xf32, #tpu.memory_space<vmem>>, vector<4x256xf32>
    %c0_12 = arith.constant 0 : index
    %c0_13 = arith.constant 0 : index
    %14 = vector.load %arg8[%c0_12, %c0_13] : memref<4x256xf32, #tpu.memory_space<vmem>>, vector<4x256xf32>
    tpu.vector_store %arg8[%c0_12, %c0_13], %13 {strides = array<i32>} : memref<4x256xf32, #tpu.memory_space<vmem>>, vector<4x256xf32>,
    %15 = tpu.iota {dimensions = array<i32: 1>} : vector<1x256xi32>
    %c16_i32_14 = arith.constant 16 : i32
    %c0_i32_15 = arith.constant 0 : i32
    %16 = arith.cmpi eq, %c16_i32_14, %c0_i32_15 : i32
    %c1_i32 = arith.constant 1 : i32
    %17 = arith.select %16, %c1_i32, %c16_i32_14 : i32
    %18 = vector.broadcast %17 : i32 to vector<1x256xi32>
    %19 = arith.remsi %15, %18 : vector<1x256xi32>
    %c0_i32_16 = arith.constant 0 : i32
    %20 = vector.broadcast %c0_i32_16 : i32 to vector<1x256xi32>
    %21 = arith.cmpi ne, %19, %20 : vector<1x256xi32>
    %c0_i32_17 = arith.constant 0 : i32
    %22 = vector.broadcast %c0_i32_17 : i32 to vector<1x256xi32>
    %23 = arith.cmpi slt, %19, %22 : vector<1x256xi32>
    %c0_i32_18 = arith.constant 0 : i32
    %24 = arith.cmpi slt, %17, %c0_i32_18 : i32
    %25 = vector.broadcast %24 : i1 to vector<1x256xi1>
    %26 = vector.broadcast %25 : vector<1x256xi1> to vector<1x256xi1>
    %27 = arith.xori %23, %26 : vector<1x256xi1>
    %28 = arith.andi %27, %21 : vector<1x256xi1>
    %29 = vector.broadcast %17 : i32 to vector<1x256xi32>
    %30 = arith.addi %19, %29 : vector<1x256xi32>
    %31 = arith.select %28, %30, %19 : vector<1x256xi1>, vector<1x256xi32>
    %c1_i32_19 = arith.constant 1 : i32
    %32 = vector.broadcast %c1_i32_19 : i32 to vector<1x256xi32>
    %33 = arith.cmpi sge, %31, %32 : vector<1x256xi32>
    %c14_i32 = arith.constant 14 : i32
    %34 = vector.broadcast %c14_i32 : i32 to vector<1x256xi32>
    %35 = arith.cmpi sle, %31, %34 : vector<1x256xi32>
    %c0_20 = arith.constant 0 : index
    %c111 = arith.constant 111 : index
    %36 = vector.load %arg6[%c0_20, %c111] : memref<4x512xf32, #tpu.memory_space<vmem>>, vector<4x256xf32>
    %c0_21 = arith.constant 0 : index
    %c127 = arith.constant 127 : index
    %37 = vector.load %arg6[%c0_21, %c127] : memref<4x512xf32, #tpu.memory_space<vmem>>, vector<4x256xf32>
    %c0_22 = arith.constant 0 : index
    %c143 = arith.constant 143 : index
    %38 = vector.load %arg6[%c0_22, %c143] : memref<4x512xf32, #tpu.memory_space<vmem>>, vector<4x256xf32>
    %39 = tpu.concatenate %36, %37, %38 in 0 : vector<4x256xf32>, vector<4x256xf32>, vector<4x256xf32> -> vector<12x256xf32>
    %c0_23 = arith.constant 0 : index
    %c112 = arith.constant 112 : index
    %40 = vector.load %arg6[%c0_23, %c112] : memref<4x512xf32, #tpu.memory_space<vmem>>, vector<4x256xf32>
    %c0_24 = arith.constant 0 : index
    %c128_25 = arith.constant 128 : index
    %41 = vector.load %arg6[%c0_24, %c128_25] : memref<4x512xf32, #tpu.memory_space<vmem>>, vector<4x256xf32>
    %c0_26 = arith.constant 0 : index
    %c144 = arith.constant 144 : index
    %42 = vector.load %arg6[%c0_26, %c144] : memref<4x512xf32, #tpu.memory_space<vmem>>, vector<4x256xf32>
    %43 = tpu.concatenate %40, %41, %42 in 0 : vector<4x256xf32>, vector<4x256xf32>, vector<4x256xf32> -> vector<12x256xf32>
    %c0_27 = arith.constant 0 : index
    %c113 = arith.constant 113 : index
    %44 = vector.load %arg6[%c0_27, %c113] : memref<4x512xf32, #tpu.memory_space<vmem>>, vector<4x256xf32>
    %c0_28 = arith.constant 0 : index
    %c129 = arith.constant 129 : index
    %45 = vector.load %arg6[%c0_28, %c129] : memref<4x512xf32, #tpu.memory_space<vmem>>, vector<4x256xf32>
    %c0_29 = arith.constant 0 : index
    %c145 = arith.constant 145 : index
    %46 = vector.load %arg6[%c0_29, %c145] : memref<4x512xf32, #tpu.memory_space<vmem>>, vector<4x256xf32>
    %47 = tpu.concatenate %44, %45, %46 in 0 : vector<4x256xf32>, vector<4x256xf32>, vector<4x256xf32> -> vector<12x256xf32>
    %cst_30 = arith.constant 0.000000e+00 : f32
    %48 = vector.shape_cast %33 : vector<1x256xi1> to vector<1x256xi1>
    %49 = vector.broadcast %48 : vector<1x256xi1> to vector<12x256xi1>
    %50 = vector.broadcast %cst_30 : f32 to vector<12x256xf32>
    %51 = arith.select %49, %39, %50 : vector<12x256xi1>, vector<12x256xf32>
    %cst_31 = arith.constant 0.000000e+00 : f32
    %52 = vector.shape_cast %35 : vector<1x256xi1> to vector<1x256xi1>
    %53 = vector.broadcast %52 : vector<1x256xi1> to vector<12x256xi1>
    %54 = vector.broadcast %cst_31 : f32 to vector<12x256xf32>
    %55 = arith.select %53, %47, %54 : vector<12x256xi1>, vector<12x256xf32>
    %56 = tpu.concatenate %51, %43, %55 in 0 : vector<12x256xf32>, vector<12x256xf32>, vector<12x256xf32> -> vector<36x256xf32>
    %c0_32 = arith.constant 0 : index
    %c0_33 = arith.constant 0 : index
    %c0_34 = arith.constant 0 : index
    %57 = vector.load %arg3[%c0_32, %c0_33, %c0_34] : memref<4x4x36xf32, #tpu.memory_space<vmem>>, vector<1x4x36xf32>
    %58 = vector.shape_cast %57 : vector<1x4x36xf32> to vector<4x36xf32>
    %cst_35 = arith.constant dense<0.000000e+00> : vector<4x256xf32>
    %59 = tpu.matmul %58, %56, %cst_35 {dimension_numbers = #tpu.dot_dimension_numbers<[1], [0], [0], [1], [0, 0, 1, 1], [], []>} : vector<4x36xf32>, vector<36x256xf32>, vector<4x256xf32> -> vector<4x256xf32>
    %c0_36 = arith.constant 0 : index
    %c0_37 = arith.constant 0 : index
    %c0_38 = arith.constant 0 : index
    %60 = vector.load %arg4[%c0_36, %c0_37, %c0_38] : memref<4x4x1xf32, #tpu.memory_space<vmem>>, vector<1x4x1xf32>
    %61 = vector.shape_cast %60 : vector<1x4x1xf32> to vector<4x1xf32>
    %62 = vector.broadcast %61 : vector<4x1xf32> to vector<4x256xf32>
    %63 = arith.addf %59, %62 : vector<4x256xf32>
    %cst_39 = arith.constant 0.000000e+00 : f32
    %64 = vector.broadcast %cst_39 : f32 to vector<4x256xf32>
    %65 = arith.maximumf %63, %64 : vector<4x256xf32>
    %c0_40 = arith.constant 0 : index
    %c128_41 = arith.constant 128 : index
    %66 = vector.load %arg7[%c0_40, %c128_41] : memref<4x512xf32, #tpu.memory_space<vmem>>, vector<4x256xf32>
    tpu.vector_store %arg7[%c0_40, %c128_41], %65 {strides = array<i32>} : memref<4x512xf32, #tpu.memory_space<vmem>>, vector<4x256xf32>,
    %c0_42 = arith.constant 0 : index
    %c111_43 = arith.constant 111 : index
    %67 = vector.load %arg7[%c0_42, %c111_43] : memref<4x512xf32, #tpu.memory_space<vmem>>, vector<4x256xf32>
    %c0_44 = arith.constant 0 : index
    %c127_45 = arith.constant 127 : index
    %68 = vector.load %arg7[%c0_44, %c127_45] : memref<4x512xf32, #tpu.memory_space<vmem>>, vector<4x256xf32>
    %c0_46 = arith.constant 0 : index
    %c143_47 = arith.constant 143 : index
    %69 = vector.load %arg7[%c0_46, %c143_47] : memref<4x512xf32, #tpu.memory_space<vmem>>, vector<4x256xf32>
    %70 = tpu.concatenate %67, %68, %69 in 0 : vector<4x256xf32>, vector<4x256xf32>, vector<4x256xf32> -> vector<12x256xf32>
    %c0_48 = arith.constant 0 : index
    %c112_49 = arith.constant 112 : index
    %71 = vector.load %arg7[%c0_48, %c112_49] : memref<4x512xf32, #tpu.memory_space<vmem>>, vector<4x256xf32>
    %c0_50 = arith.constant 0 : index
    %c128_51 = arith.constant 128 : index
    %72 = vector.load %arg7[%c0_50, %c128_51] : memref<4x512xf32, #tpu.memory_space<vmem>>, vector<4x256xf32>
    %c0_52 = arith.constant 0 : index
    %c144_53 = arith.constant 144 : index
    %73 = vector.load %arg7[%c0_52, %c144_53] : memref<4x512xf32, #tpu.memory_space<vmem>>, vector<4x256xf32>
    %74 = tpu.concatenate %71, %72, %73 in 0 : vector<4x256xf32>, vector<4x256xf32>, vector<4x256xf32> -> vector<12x256xf32>
    %c0_54 = arith.constant 0 : index
    %c113_55 = arith.constant 113 : index
    %75 = vector.load %arg7[%c0_54, %c113_55] : memref<4x512xf32, #tpu.memory_space<vmem>>, vector<4x256xf32>
    %c0_56 = arith.constant 0 : index
    %c129_57 = arith.constant 129 : index
    %76 = vector.load %arg7[%c0_56, %c129_57] : memref<4x512xf32, #tpu.memory_space<vmem>>, vector<4x256xf32>
    %c0_58 = arith.constant 0 : index
    %c145_59 = arith.constant 145 : index
    %77 = vector.load %arg7[%c0_58, %c145_59] : memref<4x512xf32, #tpu.memory_space<vmem>>, vector<4x256xf32>
    %78 = tpu.concatenate %75, %76, %77 in 0 : vector<4x256xf32>, vector<4x256xf32>, vector<4x256xf32> -> vector<12x256xf32>
    %cst_60 = arith.constant 0.000000e+00 : f32
    %79 = vector.shape_cast %33 : vector<1x256xi1> to vector<1x256xi1>
    %80 = vector.broadcast %79 : vector<1x256xi1> to vector<12x256xi1>
    %81 = vector.broadcast %cst_60 : f32 to vector<12x256xf32>
    %82 = arith.select %80, %70, %81 : vector<12x256xi1>, vector<12x256xf32>
    %cst_61 = arith.constant 0.000000e+00 : f32
    %83 = vector.shape_cast %35 : vector<1x256xi1> to vector<1x256xi1>
    %84 = vector.broadcast %83 : vector<1x256xi1> to vector<12x256xi1>
    %85 = vector.broadcast %cst_61 : f32 to vector<12x256xf32>
    %86 = arith.select %84, %78, %85 : vector<12x256xi1>, vector<12x256xf32>
    %87 = tpu.concatenate %82, %74, %86 in 0 : vector<12x256xf32>, vector<12x256xf32>, vector<12x256xf32> -> vector<36x256xf32>
    %c1 = arith.constant 1 : index
    %c0_62 = arith.constant 0 : index
    %c0_63 = arith.constant 0 : index
    %88 = vector.load %arg3[%c1, %c0_62, %c0_63] : memref<4x4x36xf32, #tpu.memory_space<vmem>>, vector<1x4x36xf32>
    %89 = vector.shape_cast %88 : vector<1x4x36xf32> to vector<4x36xf32>
    %cst_64 = arith.constant dense<0.000000e+00> : vector<4x256xf32>
    %90 = tpu.matmul %89, %87, %cst_64 {dimension_numbers = #tpu.dot_dimension_numbers<[1], [0], [0], [1], [0, 0, 1, 1], [], []>} : vector<4x36xf32>, vector<36x256xf32>, vector<4x256xf32> -> vector<4x256xf32>
    %c1_65 = arith.constant 1 : index
    %c0_66 = arith.constant 0 : index
    %c0_67 = arith.constant 0 : index
    %91 = vector.load %arg4[%c1_65, %c0_66, %c0_67] : memref<4x4x1xf32, #tpu.memory_space<vmem>>, vector<1x4x1xf32>
    %92 = vector.shape_cast %91 : vector<1x4x1xf32> to vector<4x1xf32>
    %93 = vector.broadcast %92 : vector<4x1xf32> to vector<4x256xf32>
    %94 = arith.addf %90, %93 : vector<4x256xf32>
    %c0_68 = arith.constant 0 : index
    %c128_69 = arith.constant 128 : index
    %95 = vector.load %arg6[%c0_68, %c128_69] : memref<4x512xf32, #tpu.memory_space<vmem>>, vector<4x256xf32>
    %96 = arith.addf %95, %94 : vector<4x256xf32>
    %c0_70 = arith.constant 0 : index
    %c128_71 = arith.constant 128 : index
    %97 = vector.load %arg6[%c0_70, %c128_71] : memref<4x512xf32, #tpu.memory_space<vmem>>, vector<4x256xf32>
    tpu.vector_store %arg6[%c0_70, %c128_71], %96 {strides = array<i32>} : memref<4x512xf32, #tpu.memory_space<vmem>>, vector<4x256xf32>,
    %c0_72 = arith.constant 0 : index
    %c111_73 = arith.constant 111 : index
    %98 = vector.load %arg6[%c0_72, %c111_73] : memref<4x512xf32, #tpu.memory_space<vmem>>, vector<4x256xf32>
    %c0_74 = arith.constant 0 : index
    %c127_75 = arith.constant 127 : index
    %99 = vector.load %arg6[%c0_74, %c127_75] : memref<4x512xf32, #tpu.memory_space<vmem>>, vector<4x256xf32>
    %c0_76 = arith.constant 0 : index
    %c143_77 = arith.constant 143 : index
    %100 = vector.load %arg6[%c0_76, %c143_77] : memref<4x512xf32, #tpu.memory_space<vmem>>, vector<4x256xf32>
    %101 = tpu.concatenate %98, %99, %100 in 0 : vector<4x256xf32>, vector<4x256xf32>, vector<4x256xf32> -> vector<12x256xf32>
    %c0_78 = arith.constant 0 : index
    %c112_79 = arith.constant 112 : index
    %102 = vector.load %arg6[%c0_78, %c112_79] : memref<4x512xf32, #tpu.memory_space<vmem>>, vector<4x256xf32>
    %c0_80 = arith.constant 0 : index
    %c128_81 = arith.constant 128 : index
    %103 = vector.load %arg6[%c0_80, %c128_81] : memref<4x512xf32, #tpu.memory_space<vmem>>, vector<4x256xf32>
    %c0_82 = arith.constant 0 : index
    %c144_83 = arith.constant 144 : index
    %104 = vector.load %arg6[%c0_82, %c144_83] : memref<4x512xf32, #tpu.memory_space<vmem>>, vector<4x256xf32>
    %105 = tpu.concatenate %102, %103, %104 in 0 : vector<4x256xf32>, vector<4x256xf32>, vector<4x256xf32> -> vector<12x256xf32>
    %c0_84 = arith.constant 0 : index
    %c113_85 = arith.constant 113 : index
    %106 = vector.load %arg6[%c0_84, %c113_85] : memref<4x512xf32, #tpu.memory_space<vmem>>, vector<4x256xf32>
    %c0_86 = arith.constant 0 : index
    %c129_87 = arith.constant 129 : index
    %107 = vector.load %arg6[%c0_86, %c129_87] : memref<4x512xf32, #tpu.memory_space<vmem>>, vector<4x256xf32>
    %c0_88 = arith.constant 0 : index
    %c145_89 = arith.constant 145 : index
    %108 = vector.load %arg6[%c0_88, %c145_89] : memref<4x512xf32, #tpu.memory_space<vmem>>, vector<4x256xf32>
    %109 = tpu.concatenate %106, %107, %108 in 0 : vector<4x256xf32>, vector<4x256xf32>, vector<4x256xf32> -> vector<12x256xf32>
    %cst_90 = arith.constant 0.000000e+00 : f32
    %110 = vector.shape_cast %33 : vector<1x256xi1> to vector<1x256xi1>
    %111 = vector.broadcast %110 : vector<1x256xi1> to vector<12x256xi1>
    %112 = vector.broadcast %cst_90 : f32 to vector<12x256xf32>
    %113 = arith.select %111, %101, %112 : vector<12x256xi1>, vector<12x256xf32>
    %cst_91 = arith.constant 0.000000e+00 : f32
    %114 = vector.shape_cast %35 : vector<1x256xi1> to vector<1x256xi1>
    %115 = vector.broadcast %114 : vector<1x256xi1> to vector<12x256xi1>
    %116 = vector.broadcast %cst_91 : f32 to vector<12x256xf32>
    %117 = arith.select %115, %109, %116 : vector<12x256xi1>, vector<12x256xf32>
    %118 = tpu.concatenate %113, %105, %117 in 0 : vector<12x256xf32>, vector<12x256xf32>, vector<12x256xf32> -> vector<36x256xf32>
    %c2 = arith.constant 2 : index
    %c0_92 = arith.constant 0 : index
    %c0_93 = arith.constant 0 : index
    %119 = vector.load %arg3[%c2, %c0_92, %c0_93] : memref<4x4x36xf32, #tpu.memory_space<vmem>>, vector<1x4x36xf32>
    %120 = vector.shape_cast %119 : vector<1x4x36xf32> to vector<4x36xf32>
    %cst_94 = arith.constant dense<0.000000e+00> : vector<4x256xf32>
    %121 = tpu.matmul %120, %118, %cst_94 {dimension_numbers = #tpu.dot_dimension_numbers<[1], [0], [0], [1], [0, 0, 1, 1], [], []>} : vector<4x36xf32>, vector<36x256xf32>, vector<4x256xf32> -> vector<4x256xf32>
    %c2_95 = arith.constant 2 : index
    %c0_96 = arith.constant 0 : index
    %c0_97 = arith.constant 0 : index
    %122 = vector.load %arg4[%c2_95, %c0_96, %c0_97] : memref<4x4x1xf32, #tpu.memory_space<vmem>>, vector<1x4x1xf32>
    %123 = vector.shape_cast %122 : vector<1x4x1xf32> to vector<4x1xf32>
    %124 = vector.broadcast %123 : vector<4x1xf32> to vector<4x256xf32>
    %125 = arith.addf %121, %124 : vector<4x256xf32>
    %cst_98 = arith.constant 0.000000e+00 : f32
    %126 = vector.broadcast %cst_98 : f32 to vector<4x256xf32>
    %127 = arith.maximumf %125, %126 : vector<4x256xf32>
    %c0_99 = arith.constant 0 : index
    %c128_100 = arith.constant 128 : index
    %128 = vector.load %arg7[%c0_99, %c128_100] : memref<4x512xf32, #tpu.memory_space<vmem>>, vector<4x256xf32>
    tpu.vector_store %arg7[%c0_99, %c128_100], %127 {strides = array<i32>} : memref<4x512xf32, #tpu.memory_space<vmem>>, vector<4x256xf32>,
    %c0_101 = arith.constant 0 : index
    %c111_102 = arith.constant 111 : index
    %129 = vector.load %arg7[%c0_101, %c111_102] : memref<4x512xf32, #tpu.memory_space<vmem>>, vector<4x256xf32>
    %c0_103 = arith.constant 0 : index
    %c127_104 = arith.constant 127 : index
    %130 = vector.load %arg7[%c0_103, %c127_104] : memref<4x512xf32, #tpu.memory_space<vmem>>, vector<4x256xf32>
    %c0_105 = arith.constant 0 : index
    %c143_106 = arith.constant 143 : index
    %131 = vector.load %arg7[%c0_105, %c143_106] : memref<4x512xf32, #tpu.memory_space<vmem>>, vector<4x256xf32>
    %132 = tpu.concatenate %129, %130, %131 in 0 : vector<4x256xf32>, vector<4x256xf32>, vector<4x256xf32> -> vector<12x256xf32>
    %c0_107 = arith.constant 0 : index
    %c112_108 = arith.constant 112 : index
    %133 = vector.load %arg7[%c0_107, %c112_108] : memref<4x512xf32, #tpu.memory_space<vmem>>, vector<4x256xf32>
    %c0_109 = arith.constant 0 : index
    %c128_110 = arith.constant 128 : index
    %134 = vector.load %arg7[%c0_109, %c128_110] : memref<4x512xf32, #tpu.memory_space<vmem>>, vector<4x256xf32>
    %c0_111 = arith.constant 0 : index
    %c144_112 = arith.constant 144 : index
    %135 = vector.load %arg7[%c0_111, %c144_112] : memref<4x512xf32, #tpu.memory_space<vmem>>, vector<4x256xf32>
    %136 = tpu.concatenate %133, %134, %135 in 0 : vector<4x256xf32>, vector<4x256xf32>, vector<4x256xf32> -> vector<12x256xf32>
    %c0_113 = arith.constant 0 : index
    %c113_114 = arith.constant 113 : index
    %137 = vector.load %arg7[%c0_113, %c113_114] : memref<4x512xf32, #tpu.memory_space<vmem>>, vector<4x256xf32>
    %c0_115 = arith.constant 0 : index
    %c129_116 = arith.constant 129 : index
    %138 = vector.load %arg7[%c0_115, %c129_116] : memref<4x512xf32, #tpu.memory_space<vmem>>, vector<4x256xf32>
    %c0_117 = arith.constant 0 : index
    %c145_118 = arith.constant 145 : index
    %139 = vector.load %arg7[%c0_117, %c145_118] : memref<4x512xf32, #tpu.memory_space<vmem>>, vector<4x256xf32>
    %140 = tpu.concatenate %137, %138, %139 in 0 : vector<4x256xf32>, vector<4x256xf32>, vector<4x256xf32> -> vector<12x256xf32>
    %cst_119 = arith.constant 0.000000e+00 : f32
    %141 = vector.shape_cast %33 : vector<1x256xi1> to vector<1x256xi1>
    %142 = vector.broadcast %141 : vector<1x256xi1> to vector<12x256xi1>
    %143 = vector.broadcast %cst_119 : f32 to vector<12x256xf32>
    %144 = arith.select %142, %132, %143 : vector<12x256xi1>, vector<12x256xf32>
    %cst_120 = arith.constant 0.000000e+00 : f32
    %145 = vector.shape_cast %35 : vector<1x256xi1> to vector<1x256xi1>
    %146 = vector.broadcast %145 : vector<1x256xi1> to vector<12x256xi1>
    %147 = vector.broadcast %cst_120 : f32 to vector<12x256xf32>
    %148 = arith.select %146, %140, %147 : vector<12x256xi1>, vector<12x256xf32>
    %149 = tpu.concatenate %144, %136, %148 in 0 : vector<12x256xf32>, vector<12x256xf32>, vector<12x256xf32> -> vector<36x256xf32>
    %c3 = arith.constant 3 : index
    %c0_121 = arith.constant 0 : index
    %c0_122 = arith.constant 0 : index
    %150 = vector.load %arg3[%c3, %c0_121, %c0_122] : memref<4x4x36xf32, #tpu.memory_space<vmem>>, vector<1x4x36xf32>
    %151 = vector.shape_cast %150 : vector<1x4x36xf32> to vector<4x36xf32>
    %cst_123 = arith.constant dense<0.000000e+00> : vector<4x256xf32>
    %152 = tpu.matmul %151, %149, %cst_123 {dimension_numbers = #tpu.dot_dimension_numbers<[1], [0], [0], [1], [0, 0, 1, 1], [], []>} : vector<4x36xf32>, vector<36x256xf32>, vector<4x256xf32> -> vector<4x256xf32>
    %c3_124 = arith.constant 3 : index
    %c0_125 = arith.constant 0 : index
    %c0_126 = arith.constant 0 : index
    %153 = vector.load %arg4[%c3_124, %c0_125, %c0_126] : memref<4x4x1xf32, #tpu.memory_space<vmem>>, vector<1x4x1xf32>
    %154 = vector.shape_cast %153 : vector<1x4x1xf32> to vector<4x1xf32>
    %155 = vector.broadcast %154 : vector<4x1xf32> to vector<4x256xf32>
    %156 = arith.addf %152, %155 : vector<4x256xf32>
    %c0_127 = arith.constant 0 : index
    %c128_128 = arith.constant 128 : index
    %157 = vector.load %arg6[%c0_127, %c128_128] : memref<4x512xf32, #tpu.memory_space<vmem>>, vector<4x256xf32>
    %158 = arith.addf %157, %156 : vector<4x256xf32>
    %c0_129 = arith.constant 0 : index
    %c128_130 = arith.constant 128 : index
    %159 = vector.load %arg6[%c0_129, %c128_130] : memref<4x512xf32, #tpu.memory_space<vmem>>, vector<4x256xf32>
    tpu.vector_store %arg6[%c0_129, %c128_130], %158 {strides = array<i32>} : memref<4x512xf32, #tpu.memory_space<vmem>>, vector<4x256xf32>,
    %c0_131 = arith.constant 0 : index
    %c0_132 = arith.constant 0 : index
    %160 = vector.load %arg8[%c0_131, %c0_132] : memref<4x256xf32, #tpu.memory_space<vmem>>, vector<4x256xf32>
    %c0_133 = arith.constant 0 : index
    %c128_134 = arith.constant 128 : index
    %161 = vector.load %arg6[%c0_133, %c128_134] : memref<4x512xf32, #tpu.memory_space<vmem>>, vector<4x256xf32>
    %162 = arith.addf %160, %161 : vector<4x256xf32>
    %c0_135 = arith.constant 0 : index
    %c0_136 = arith.constant 0 : index
    %c0_137 = arith.constant 0 : index
    %163 = vector.load %arg5[%c0_135, %c0_136, %c0_137] : memref<1x4x256xf32, #tpu.memory_space<vmem>>, vector<1x4x256xf32>
    %164 = vector.shape_cast %163 : vector<1x4x256xf32> to vector<4x256xf32>
    %165 = vector.shape_cast %162 : vector<4x256xf32> to vector<1x4x256xf32>
    tpu.vector_store %arg5[%c0_135, %c0_136, %c0_137], %165 {strides = array<i32>} : memref<1x4x256xf32, #tpu.memory_space<vmem>>, vector<1x4x256xf32>,
    return
  }
  func.func @transform_1(%arg0: i32, %arg1: i32) -> (i32, i32, i32) {
    %c0_i32 = arith.constant 0 : i32
    %c0_i32_0 = arith.constant 0 : i32
    %c0_i32_1 = arith.constant 0 : i32
    %c0_i32_2 = arith.constant 0 : i32
    return %c0_i32, %c0_i32_0, %c0_i32_1 : i32, i32, i32
  }
  func.func @transform_2(%arg0: i32, %arg1: i32) -> (i32, i32, i32) {
    %c0_i32 = arith.constant 0 : i32
    %c0_i32_0 = arith.constant 0 : i32
    %c0_i32_1 = arith.constant 0 : i32
    %c0_i32_2 = arith.constant 0 : i32
    return %c0_i32, %c0_i32_0, %c0_i32_1 : i32, i32, i32
  }
  func.func @transform_3(%arg0: i32, %arg1: i32) -> (i32, i32, i32) {
    %c0_i32 = arith.constant 0 : i32
    %c0_i32_0 = arith.constant 0 : i32
    return %arg0, %c0_i32, %arg1 : i32, i32, i32
  }
}

</mosaic_0001>

<bundles_post_ra>
// kernel: tpu_custom_call.1
= control target key start
LH: loop header
LB: loop body
LE: loop exit
PB: predicated region body
PF: predicated region fallthrough
CT: control target
= control target key end

     0   :  { %8 = vsyncpa [#allocation7], 0  ;;  %s2503_s0 = inlined_call_operand.vmem [shape: f32[2,4,256], index: 0, kind: input, shape index: {}]   ;;  %s2504_s1 = inlined_call_operand.hbm [shape: f32[4,4,36], index: 1, kind: input, shape index: {}]   ;;  %s2505_s2 = inlined_call_operand.vmem [shape: f32[4,4,1], index: 2, kind: input, shape index: {}]   ;;  %s2506_s3 = inlined_call_operand.hbm [shape: f32[2,4,256], index: 3, kind: output, shape index: {}]  }
   0x1   :  { %9 = vsyncpa [#allocation8], 0 }
   0x2   :  { %11 = vsyncpa [#allocation8 + $0x1], 0  ;;  %s1924_s12 = smov 0   ;;  %s1926_s13 = smov 0  }
   0x3   :  { %s1928_s14 = smov 0   ;;  %s1930_s15 = smov 0  }
   0x4   :  { %s1932_s16 = smov 0   ;;  %s1934_s17 = smov 0  }
   0x5 LB: > { %s1362_s18 = sadd.s32 4294967295, %s1890_s17   ;;  %s1363_s19 = sadd.s32 4294967294, %s1890_s17   ;;  %s1890_s17 = sphi %s1934_s17, %s17_s17   ;;  %s1886_s16 = sphi %s1932_s16, %s2540_s16   ;;  %s1882_s15 = sphi %s1930_s15, %s2539_s15   ;;  %s1878_s14 = sphi %s1928_s14, %s2538_s14   ;;  %s1874_s13 = sphi %s1926_s13, %s2537_s13   ;;  %s1870_s12 = sphi %s1924_s12, %s2536_s12  }
   0x6   : > { %s29_s20 = sadd.s32 1, %s1886_s16  ;;  %s80_s21 = sadd.s32 1, %s1878_s14 }
   0x7   : > { %p31_p0 = scmp.ge.s32.totalorder %s29_s20, 2  ;;  %p90_p1 = scmp.ne.s32.totalorder %s1878_s14, %s1874_s13 }
   0x8   : > { %p91_p2 = scmp.eq.s32.totalorder %s1362_s18, 1  ;;  %p96_p3 = scmp.ne.s32.totalorder %s1874_s13, %s1870_s12 }
   0x9   : > { %s2542_s20 = smov (%p31_p0, %s29_s20), 0  ;;  %p97_p5 = scmp.eq.s32.totalorder %s1363_s19, 1 }
   0xa   : > { %p1964_p4 = por %p91_p2, %p90_p1  ;;  %s75_s23 = ssub.s32 %s1886_s16, %s2542_s20 }
   0xb   : > { %p1364_p6 = scmp.ge.s32.totalorder %s1890_s17, 1  ;;  %p78_p7 = scmp.eq.s32.totalorder %s75_s23, 0 }
   0xc   : > { %s2511_s22 = scalar_select %p1964_p4, 1, 0 }
   0xd   : > { %p1971_p8 = por %p97_p5, %p96_p3  ;;  %p104_p9 = scmp.lt.s32.totalorder %s1890_s17, 3 }
   0xe   : > { %s1977_s25 = scalar_select %p78_p7, %s1878_s14, %s80_s21  }
   0xf   : > { %s2512_s24 = scalar_select %p1971_p8, 1, 0 }
  0x10   : > { %p1979_p10 = pnand %p1364_p6, %p104_p9  ;;  %p1983_p11 = scmp.eq.s32.totalorder %s1362_s18, 0 }
  0x11   : > { %s1892_s28 = smov [#allocation6]   ;;  %s1778_s6 = scalar_lea.hbm %s2504_s1, 256 }
  0x12   : > { %s2513_s26 = scalar_select %p1979_p10, 1, 0 }
  0x13   : > { %s2514_s27 = scalar_select %p1983_p11, 1, 0 }
  0x14   : > { %p1464_p12 = pneg %p1979_p10  ;;  %s116_s29 = sshll.u32 %s1892_s28, 4  ;;  %s117_s29 = int_to_ptr.vmem [resolvable:$true] %s116_s29 }
  0x15   : > { %p1779_p0 = scmp.ne.s32.totalorder %s2504_s1, %s1778_s6  ;;  %p1785_p5 = scmp.lt.u32.totalorder %s1778_s6, %s2504_s1 }
  0x16   : > { %p1991_p13 = pnand %p1983_p11, %p1464_p12 }
  0x18   : > { %p1780_p1 = pneg %p1991_p13 }
  0x1a   : > { %p1781_p2 = pnand %p1780_p1, %p1779_p0 }
  0x1c   : > { %p1782_p3 = pneg %p1781_p2 }
  0x1e   : > { %p1787_p6 = pnand %p1785_p5, %p1782_p3 }
  0x20   : > { %1790 = shalt.err (!%p1787_p6)
}
  0x21   : > { %s1791_s11 = scalar_lea.vmem %s117_s29, 256  ;;  %p1799_p8 = scmp.lt.s32.totalorder %s117_s29, %s117_s29 }
  0x22   : > { %p1792_p7 = scmp.ne.s32.totalorder %s117_s29, %s1791_s11  ;;  %p1800_p4 = scmp.lt.s32.totalorder %s1791_s11, %s1791_s11 }
  0x24   : > { %p1794_p9 = pnand %p1792_p7, %p1780_p1  ;;  %p1801_p11 = por %p1800_p4, %p1799_p8 }
  0x26   : > { %p1795_p12 = pneg %p1794_p9 }
  0x28   : > { %p1802_p10 = pnand %p1801_p11, %p1795_p12 }
  0x2a   : > { %1805 = shalt.err (!%p1802_p10)
}
  0x2b   : > { %s1893_s18 = smov 64   ;;  %s1894_s19 = smov 4  }
  0x2c   : > { %1467 = dma.hbm_to_vmem [thread:$0]  (!%p1991_p13), %s2504_s1, 256, %s117_s29, [#allocation7], %s1893_s18, %s1893_s18, %s1894_s19  }
  0x2d   : > { %p2516_p0 = scmp.ne.s32.totalorder %s2513_s26, 0 }
  0x2e   : > { %p2517_p2 = scmp.ne.s32.totalorder (!%p2516_p0), %s2514_s27, 0 }
  0x2f   : > { %135 = sbr.rel (%p2516_p0) target bundleno = 2026 (0x7ea), region = 28 }
  0x36   : > { %1859 = dma.done.wait (%p2517_p2), [#allocation7], 256  }
  0x37   : > { %1861 = vsyncadd (%p2517_p2), [#allocation7], 4294967040  ;;  %s149_s28 = sand.u32 1, %s1874_s13   ;;  %v1895_v0 = vmov 0.0   ;;  %s1408_s26 = sshll.u32 %s1882_s15, 3 }
  0x38   : > { %s2020_s4 = sshll.u32 %s149_s28, 3  ;;  %153 = vst [vmem:[#allocation2] sm:$0xf] %v1895_v0  ;;  %154 = vst [vmem:[#allocation2 + $0xc] sm:$0xf] %v1895_v0  ;;  %s163_s30 = scalar_lea.vmem %s2503_s0, %s1408_s26 }
  0x39   : > { %155 = vst [vmem:[#allocation3] sm:$0xf] %v1895_v0  ;;  %156 = vst [vmem:[#allocation3 + $0xc] sm:$0xf] %v1895_v0  ;;  %v197_v1 = vld [vmem:[%s163_s30] sm:$0xff]  ;;  %s151_s5 = scalar_lea.vmem [#allocation9], %s2020_s4 }
  0x3a   : > { %198 = vst [vmem:[#allocation2 + $0x4] sm:$0xff] %v197_v1 }
  0x3b   : > { %206 = vsyncadd [#allocation5], 128 }
  0x3c   : > { %1862 = dma.done.wait [#allocation5], 128 }
  0x3d   : > { %1863 = vsyncadd [#allocation5], 4294967168  ;;  %492 = vmatprep.mubr.f32.mxu0 %v1895_v0  ;;  %741 = vmatprep.mubr.f32.mxu1 %v1895_v0  ;;  %s1896_s6 = smov 96   ;;  %s1897_s7 = smov 112   ;;  %vm275_vm0 = vcmask 785408   ;;  %vm260_vm1 = vcmask 916480  }
  0x3e   : > { %vm278_vm2 = vcmask 1043456   ;;  %s1898_s8 = smov 17   ;;  %s1899_s9 = smov 16   ;;  %v1901_v62 = vmov 0   ;;  %v412_v1 = vld [vmem:[%s2505_s2] sm:$0xf] }
  0x3f   : > { %v247_v2 = vld [vmem:[#allocation2 + $0xc] sm:$0xf]  ;;  %s1900_s10 = smov 15   ;;  %1700 = vset.pattern.permute.xlu1 %v1901_v62  ;;  %1589 = vset.pattern.permute.xlu0 %v1901_v62  ;;  %vm331_vm3 = vcmask 138240   ;;  %vm400_vm4 = vcmask 130048   ;;  %vm363_vm7 = vcmask 121856  }
  0x40   : > { %273 = vrot.lane.b32.xlu1 %v247_v2, %s1896_s6  ;;  %v297_v11 = vcombine.low %v247_v2, %v247_v2  ;;  %v213_v2 = vlaneseq  ;;  %vm1902_vm8 = vmmov 1   ;;  %v411_v62 = vld [vmem:[#allocation6] sm:$0xf]  ;;  %vm418_vm15 = vcmask 293888   ;;  %s1409_s30 = sshll.u32 %s1882_s15, 7  ;;  %s1258_s15 = scalar_lea.sflag [#allocation8], %s149_s28 }
  0x41   : > { %v2033_v3 = vld [vmem:[#allocation2 + $0x4] sm:$0xff]  ;;  %p2534_p8 = scmp.ne.s32.totalorder %s2511_s22, 0  ;;  %s1903_s11 = smov [#allocation9]  }
  0x42   : > { %v2035_v4 = vld [vmem:[#allocation2] sm:$0xff]  ;;  %269 = vrot.lane.b32.xlu0 %v2033_v3, %s1896_s6  ;;  %v284_v5 = vcombine.low %v2033_v3, %v2033_v3  ;;  %v268_v6 = vcombine.high %v2033_v3, %v2033_v3  ;;  %v2044_v7 = vld [vmem:[#allocation2 + $0x8] sm:$0xf]  ;;  %v1549_v14 = vpack.i.bf16 %v297_v11, %v2033_v3  ;;  %s1810_s18 = sshll.u32 %s1903_s11, 4  ;;  %s1811_s18 = int_to_ptr.vmem [resolvable:$false] %s1810_s18 }
  0x43   : > { %v253_v8 = vcombine.low %v2044_v7, %v2044_v7  ;;  %v252_v9 = vcombine.low %v2035_v4, %v2035_v4  ;;  %v250_v19 = vcombine.high %v2035_v4, %v2035_v4  ;;  %s1812_s19 = scalar_lea.vmem %s1811_s18, 256 }
  0x44   : > { %v1534_v10 = vpack.i.bf16 %v2033_v3, %v284_v5  ;;  %271 = vrot.lane.b32.xlu1 %v268_v6, %s1896_s6 }
  0x45   : > { %v1539_v12 = vpack.i.bf16 %v253_v8, %v2035_v4  ;;  %v1544_v13 = vpack.i.bf16 %v284_v5, %v252_v9  ;;  %v214_v5 = vand.u32 127, %v213_v2 }
  0x46   : > { %1535 = vrot.lane.b32.xlu0 %v1534_v10, %s1897_s7 }
  0x47   : > { %v220_v8 = vand.u32 15, %v214_v5 }
  0x48   : > { %1545 = vrot.lane.b32.xlu1 %v1544_v13, %s1897_s7 }
  0x49   : > { %vm2105_vm5 = vcmp.ge.s32.totalorder %v220_v8, 1  ;;  %vm2145_vm12 = vcmp.le.s32.totalorder %v220_v8, 14 }
  0x4a   : > { %1540 = vrot.lane.b32.xlu0 %v1539_v12, %s1897_s7  ;;  %vm2135_vm10 = vmpackc.low %vm1902_vm8, %vm2105_vm5 }
  0x4b   : > { %vm2165_vm14 = vmpackc.low %vm2145_vm12, %vm1902_vm8 }
  0x4e   : > { %1550 = vrot.lane.b32.xlu0 %v1549_v14, %s1897_s7 }
  0xb2   : > { %v274_v15 = vpop.permute.xlu1 %273 }
  0xb4   : > { %v2058_v16 = vpop.permute.xlu0 %269 }
  0xb5   : > { %v382_v50 = vrot.slane %v2058_v16, 4 }
  0xb6   : > { %v272_v18 = vpop.permute.xlu1 %271 }
  0xb7   : > { %v276_v22 = vsel %vm275_vm0, %v2058_v16, %v272_v18  ;;  %v277_v23 = vsel %vm275_vm0, %v272_v18, %v274_v15 }
  0xb8   : > { %v1536_v17 = vpop.permute.xlu0 %1535  ;;  %v1554_v24 = vpack.i.bf16 %v277_v23, %v276_v22  ;;  %v384_v36 = vrot.slane %v276_v22, 4  ;;  %v386_v51 = vrot.slane %v277_v23, 4 }
  0xb9   : > { %v1538_v20 = vunpack.i.h.bf16 %v1536_v17  ;;  %v1537_v21 = vunpack.i.l.bf16 %v1536_v17 }
  0xba   : > { %1555 = vrot.lane.b32.xlu1 %v1554_v24, %s1898_s8  ;;  %v1546_v28 = vpop.permute.xlu1 %1545 }
  0xbb   : > { %v289_v25 = vsel %vm260_vm1, %v1537_v21, %v1538_v20  ;;  %v295_v26 = vsel %vm278_vm2, %v2044_v7, %v1538_v20  ;;  %v1547_v33 = vunpack.i.l.bf16 %v1546_v28  ;;  %v293_v34 = vsel %vm278_vm2, %v2035_v4, %v1537_v21 }
  0xbc   : > { %v1541_v27 = vpop.permute.xlu0 %1540  ;;  %v294_v29 = vsel %vm278_vm2, %v250_v19, %v289_v25  ;;  %v381_v30 = vrot.slane %v295_v26, 4  ;;  %v1548_v38 = vunpack.i.h.bf16 %v1546_v28  ;;  %v379_v43 = vrot.slane %v293_v34, 4 }
  0xbd   : > { %v1543_v31 = vunpack.i.h.bf16 %v1541_v27  ;;  %v1542_v32 = vunpack.i.l.bf16 %v1541_v27  ;;  %v380_v35 = vrot.slane %v294_v29, 4 }
  0xbe   : > { %v383_v56 = vsel %vm278_vm2, %v379_v43, %v382_v50  ;;  %v387_v57 = vsel %vm278_vm2, %v381_v30, %v386_v51  ;;  %v309_v63 = vsel %vm278_vm2, %v2035_v4, %v1548_v38 }
  0xbf   : > { %v262_v37 = vsel %vm260_vm1, %v1542_v32, %v1543_v31  ;;  %v261_v39 = vsel %vm260_vm1, %v1547_v33, %v1542_v32  ;;  %v1574_v41 = vpack.i.bf16 %v381_v30, %v380_v35  ;;  %v385_v47 = vsel %vm278_vm2, %v380_v35, %v384_v36 }
  0xc0   : > { %v1551_v40 = vpop.permute.xlu0 %1550  ;;  %v280_v42 = vsel %vm278_vm2, %v250_v19, %v262_v37  ;;  %v279_v48 = vsel %vm278_vm2, %v2035_v4, %v261_v39  ;;  %v281_v49 = vsel %vm278_vm2, %v2044_v7, %v1543_v31  ;;  %v1579_v54 = vpack.i.bf16 %v385_v47, %v379_v43 }
  0xc1   : > { %v1553_v44 = vunpack.i.h.bf16 %v1551_v40  ;;  %v1552_v45 = vunpack.i.l.bf16 %v1551_v40  ;;  %v1559_v46 = vpack.i.bf16 %v280_v42, %v2058_v16  ;;  %1575 = vrot.lane.b32.xlu1 %v1574_v41, %s1899_s9  ;;  %v1564_v55 = vpack.i.bf16 %v279_v48, %v281_v49 }
  0xc2   : > { %v1584_v60 = vpack.i.bf16 %v383_v56, %v387_v57 }
  0xc3   : > { %v304_v52 = vsel %vm260_vm1, %v1548_v38, %v1552_v45  ;;  %v305_v53 = vsel %vm260_vm1, %v1552_v45, %v1553_v44  ;;  %1560 = vrot.lane.b32.xlu0 %v1559_v46, %s1898_s8 }
  0xc4   : > { %v310_v58 = vsel %vm278_vm2, %v250_v19, %v304_v52  ;;  %v311_v59 = vsel %vm278_vm2, %v2044_v7, %v305_v53  ;;  %v215_v7 = vadd.s32 128, %v214_v5 }
  0xc5   : > { %1580 = vrot.lane.b32.xlu1 %v1579_v54, %s1899_s9  ;;  %v1569_v61 = vpack.i.bf16 %v311_v59, %v310_v58 }
  0xc6   : > { %v227_v11 = vand.u32 15, %v215_v7 }
  0xc7   : > { %1565 = vrot.lane.b32.xlu0 %v1564_v55, %s1898_s8 }
  0xc8   : > { %vm2110_vm6 = vcmp.ge.s32.totalorder %v227_v11, 1  ;;  %vm2139_vm11 = vcmp.le.s32.totalorder %v227_v11, 14 }
  0xc9   : > { %1585 = vrot.lane.b32.xlu1 %v1584_v60, %s1899_s9  ;;  %vm2126_vm9 = vmpackc.low %vm1902_vm8, %vm2110_vm6 }
  0xca   : > { %vm2156_vm13 = vmpackc.low %vm2139_vm11, %vm1902_vm8 }
  0xcb   : > { %1570 = vrot.lane.b32.xlu0 %v1569_v61, %s1900_s10 }
  0xcd   : > { %359 = vrot.lane.b32.xlu1 %v276_v22, %s1900_s10 }
  0xcf   : > { %351 = vrot.lane.b32.xlu0 %v309_v63, %s1900_s10 }
  0xd1   : > { %357 = vrot.lane.b32.xlu1 %v2058_v16, %s1900_s10 }
  0xd3   : > { %361 = vrot.lane.b32.xlu0 %v277_v23, %s1900_s10 }
  0xd7   : > { %415 = vperm.xlu0 %1589, %v412_v1   ;;  %v509_v1 = vld [vmem:[#allocation3 + $0xc] sm:$0xf] }
  0xd8   : > { %534 = vrot.lane.b32.xlu1 %v509_v1, %s1896_s6 }
 0x12c   : > { %v1556_v6 = vpop.permute.xlu1 %1555 }
 0x12d   : > { %v1558_v9 = vunpack.i.h.bf16 %v1556_v6  ;;  %v1557_v10 = vunpack.i.l.bf16 %v1556_v6 }
 0x12f   : > { %v335_v20 = vsel %vm331_vm3, %v1557_v10, %v1558_v9 }
 0x130   : > { %v343_v29 = vsel %vm2110_vm6, %v335_v20, 0.0 }
 0x133   : > { %v1576_v4 = vpop.permute.xlu1 %1575 }
 0x134   : > { %v1578_v12 = vunpack.i.h.bf16 %v1576_v4  ;;  %v1577_v13 = vunpack.i.l.bf16 %v1576_v4  ;;  %v556_v4 = vcombine.low %v509_v1, %v509_v1 }
 0x135   : > { %v1561_v14 = vpop.permute.xlu0 %1560 }
 0x136   : > { %v1562_v15 = vunpack.i.l.bf16 %v1561_v14  ;;  %v402_v23 = vsel %vm400_vm4, %v1577_v13, %v1578_v12  ;;  %v1563_v25 = vunpack.i.h.bf16 %v1561_v14 }
 0x137   : > { %v1581_v18 = vpop.permute.xlu1 %1580  ;;  %v410_v32 = vsel %vm278_vm2, %v343_v29, %v402_v23 }
 0x138   : > { %v334_v17 = vsel %vm331_vm3, %v1562_v15, %v1557_v10  ;;  %v1582_v21 = vunpack.i.l.bf16 %v1581_v18  ;;  %v1583_v42 = vunpack.i.h.bf16 %v1581_v18 }
 0x139   : > { %v1566_v22 = vpop.permute.xlu0 %1565  ;;  %v342_v24 = vsel %vm2105_vm5, %v334_v17, 0.0 }
 0x13a   : > { %v1568_v26 = vunpack.i.h.bf16 %v1566_v22  ;;  %v1567_v27 = vunpack.i.l.bf16 %v1566_v22  ;;  %v401_v28 = vsel %vm400_vm4, %v1582_v21, %v1577_v13 }
 0x13b   : > { %v1586_v30 = vpop.permute.xlu1 %1585  ;;  %v409_v35 = vsel %vm278_vm2, %v342_v24, %v401_v28 }
 0x13c   : > { %v333_v31 = vsel %vm331_vm3, %v1563_v25, %v1567_v27  ;;  %v332_v34 = vsel %vm331_vm3, %v1568_v26, %v1563_v25  ;;  %v1587_v36 = vunpack.i.l.bf16 %v1586_v30  ;;  %v1588_v43 = vunpack.i.h.bf16 %v1586_v30 }
 0x13d   : > { %v1571_v37 = vpop.permute.xlu0 %1570  ;;  %v1410_v38 = vpack.c.bf16 %v410_v32, %v333_v31  ;;  %v1413_v39 = vpack.c.bf16 %v409_v35, %v332_v34 }
 0x13e   : > { %v1573_v44 = vunpack.i.h.bf16 %v1571_v37  ;;  %v1572_v45 = vunpack.i.l.bf16 %v1571_v37  ;;  %v404_v47 = vsel %vm400_vm4, %v1583_v42, %v1587_v36  ;;  %v403_v53 = vsel %vm400_vm4, %v1588_v43, %v1583_v42 }
 0x13f   : > { %1412 = vmatprep.subr.msk.bf16.mxu0 %vm2126_vm9, %v1410_v38  ;;  %v360_v49 = vpop.permute.xlu1 %359 }
 0x140   : > { %v365_v48 = vsel %vm363_vm7, %v1572_v45, %v1573_v44  ;;  %1415 = vmatpush1.bf16.msk.msra.mxu0 %vm2135_vm10, %v1413_v39 }
 0x141   : > { %v1416_v51 = vpack.c.bf16 %v365_v48, %v404_v47  ;;  %v352_v52 = vpop.permute.xlu0 %351 }
 0x142   : > { %v364_v54 = vsel %vm363_vm7, %v352_v52, %v1572_v45 }
 0x143   : > { %v1419_v56 = vpack.c.bf16 %v364_v54, %v403_v53  ;;  %1418 = vmatprep.subr.msk.bf16.mxu0 %vm2156_vm13, %v1416_v51  ;;  %v358_v57 = vpop.permute.xlu1 %357 }
 0x144   : > { %v366_v58 = vsel %vm363_vm7, %v358_v57, %v360_v49 }
 0x145   : > { %v362_v59 = vpop.permute.xlu0 %361  ;;  %1421 = vmatpush1.bf16.msk.msra.mxu0 %vm2165_vm14, %v1419_v56  ;;  %v374_v63 = vsel %vm2145_vm12, %v366_v58, 0.0 }
 0x146   : > { %v367_v60 = vsel %vm363_vm7, %v360_v49, %v362_v59 }
 0x147   : > { %v375_v61 = vsel %vm2139_vm11, %v367_v60, 0.0 }
 0x148   : > { %1375 = vmatprep.subr.msk.mxu0 %vm278_vm2, %v375_v61 }
 0x149   : > { %1376 = vmatpush1.msk.msra.mxu0 %vm278_vm2, %v374_v63 }
 0x14a   : > { %1377 = vmatmul.mubr.msk.f32.vlgmr.msra.gmra.mrb[0].mxu0 %vm418_vm15, %v411_v62  ;;  %v535_v24 = vpop.permute.xlu1 %534 }
 0x14b   : > { %990 = vmatprep.mubr.f32.mxu0 %v1895_v0 }
 0x156   : > { %v416_v2 = vpop.permute.xlu0 %415 }
 0x21d   : > { %v494_v5 = vpop.f32.mrb[0].mxu0 }
 0x21e   : > { %v495_v6 = vadd.f32 %v494_v5, %v416_v2  ;;  %v496_v7 = vpop.f32.mrb[1].mxu0 }
 0x21f   : > { %v497_v8 = vadd.f32 %v496_v7, %v416_v2 }
 0x220   : > { %v499_v9 = vmax.f32 %v495_v6, 0.0 }
 0x221   : > { %v500_v10 = vmax.f32 %v497_v8, 0.0 }
 0x222   : > { %v1775_v13 = vcombine.low %v499_v9, %v499_v9 }
 0x223   : > { %v503_v11 = vcombine.low %v499_v9, %v500_v10  ;;  %v1774_v12 = vcombine.low %v500_v10, %v500_v10 }
 0x225   : > { %505 = vst [vmem:[#allocation3 + $0x4] sm:$0xff] %v503_v11  ;;  %530 = vrot.lane.b32.xlu1 %v503_v11, %s1896_s6  ;;  %v1605_v14 = vpack.i.bf16 %v556_v4, %v503_v11  ;;  %532 = vrot.lane.b32.xlu0 %v1774_v12, %s1896_s6  ;;  %v1590_v15 = vpack.i.bf16 %v503_v11, %v1775_v13 }
 0x229   : > { %1591 = vrot.lane.b32.xlu1 %v1590_v15, %s1897_s7 }
 0x22c   : > { %v2187_v17 = vld [vmem:[#allocation3] sm:$0xff]  ;;  %v507_v18 = vld [vmem:[#allocation3 + $0x8] sm:$0xf] }
 0x22d   : > { %v515_v20 = vcombine.low %v507_v18, %v507_v18  ;;  %v514_v21 = vcombine.low %v2187_v17, %v2187_v17  ;;  %v512_v34 = vcombine.high %v2187_v17, %v2187_v17 }
 0x22f   : > { %v1595_v22 = vpack.i.bf16 %v515_v20, %v2187_v17  ;;  %v1600_v23 = vpack.i.bf16 %v1775_v13, %v514_v21 }
 0x231   : > { %1596 = vrot.lane.b32.xlu0 %v1595_v22, %s1897_s7  ;;  %1601 = vrot.lane.b32.xlu1 %v1600_v23, %s1897_s7 }
 0x235   : > { %1606 = vrot.lane.b32.xlu0 %v1605_v14, %s1897_s7 }
 0x297   : > { %v531_v25 = vpop.permute.xlu1 %530  ;;  %v533_v26 = vpop.permute.xlu0 %532 }
 0x298   : > { %v536_v27 = vsel %vm275_vm0, %v531_v25, %v533_v26  ;;  %v537_v28 = vsel %vm275_vm0, %v533_v26, %v535_v24  ;;  %v631_v54 = vrot.slane %v531_v25, 4 }
 0x299   : > { %v1610_v30 = vpack.i.bf16 %v537_v28, %v536_v27  ;;  %v633_v43 = vrot.slane %v536_v27, 4  ;;  %v635_v56 = vrot.slane %v537_v28, 4 }
 0x29b   : > { %v1592_v29 = vpop.permute.xlu1 %1591  ;;  %1611 = vrot.lane.b32.xlu1 %v1610_v30, %s1898_s8 }
 0x29c   : > { %v1594_v31 = vunpack.i.h.bf16 %v1592_v29  ;;  %v1593_v32 = vunpack.i.l.bf16 %v1592_v29 }
 0x29e   : > { %v548_v35 = vsel %vm260_vm1, %v1593_v32, %v1594_v31  ;;  %v554_v36 = vsel %vm278_vm2, %v507_v18, %v1594_v31  ;;  %v552_v42 = vsel %vm278_vm2, %v2187_v17, %v1593_v32 }
 0x29f   : > { %v553_v37 = vsel %vm278_vm2, %v512_v34, %v548_v35  ;;  %v630_v38 = vrot.slane %v554_v36, 4  ;;  %v628_v48 = vrot.slane %v552_v42, 4 }
 0x2a0   : > { %v629_v39 = vrot.slane %v553_v37, 4 }
 0x2a1   : > { %v632_v62 = vsel %vm278_vm2, %v628_v48, %v631_v54  ;;  %v636_v63 = vsel %vm278_vm2, %v630_v38, %v635_v56 }
 0x2a2   : > { %v1630_v44 = vpack.i.bf16 %v630_v38, %v629_v39  ;;  %v634_v49 = vsel %vm278_vm2, %v629_v39, %v633_v43  ;;  %v1640_v4 = vpack.i.bf16 %v632_v62, %v636_v63 }
 0x2a3   : > { %v1597_v45 = vpop.permute.xlu0 %1596  ;;  %v1602_v47 = vpop.permute.xlu1 %1601  ;;  %v1635_v59 = vpack.i.bf16 %v634_v49, %v628_v48 }
 0x2a4   : > { %v1599_v51 = vunpack.i.h.bf16 %v1597_v45  ;;  %v1598_v52 = vunpack.i.l.bf16 %v1597_v45  ;;  %v1603_v53 = vunpack.i.l.bf16 %v1602_v47  ;;  %1631 = vrot.lane.b32.xlu1 %v1630_v44, %s1899_s9  ;;  %v1604_v1 = vunpack.i.h.bf16 %v1602_v47 }
 0x2a6   : > { %v523_v57 = vsel %vm260_vm1, %v1598_v52, %v1599_v51  ;;  %v522_v58 = vsel %vm260_vm1, %v1603_v53, %v1598_v52  ;;  %v540_v8 = vsel %vm278_vm2, %v507_v18, %v1599_v51  ;;  %v568_v15 = vsel %vm278_vm2, %v2187_v17, %v1604_v1 }
 0x2a7   : > { %v1607_v60 = vpop.permute.xlu0 %1606  ;;  %v539_v61 = vsel %vm278_vm2, %v512_v34, %v523_v57  ;;  %v538_v7 = vsel %vm278_vm2, %v2187_v17, %v522_v58 }
 0x2a8   : > { %v1609_v2 = vunpack.i.h.bf16 %v1607_v60  ;;  %v1608_v5 = vunpack.i.l.bf16 %v1607_v60  ;;  %v1615_v6 = vpack.i.bf16 %v539_v61, %v531_v25  ;;  %1636 = vrot.lane.b32.xlu1 %v1635_v59, %s1899_s9  ;;  %v1620_v11 = vpack.i.bf16 %v538_v7, %v540_v8 }
 0x2aa   : > { %v563_v9 = vsel %vm260_vm1, %v1604_v1, %v1608_v5  ;;  %v564_v10 = vsel %vm260_vm1, %v1608_v5, %v1609_v2  ;;  %1616 = vrot.lane.b32.xlu0 %v1615_v6, %s1898_s8 }
 0x2ab   : > { %v569_v12 = vsel %vm278_vm2, %v512_v34, %v563_v9  ;;  %v570_v13 = vsel %vm278_vm2, %v507_v18, %v564_v10  ;;  %v1378_v18 = vld [vmem:[%s2505_s2 + $0x4] sm:$0xf] }
 0x2ac   : > { %1641 = vrot.lane.b32.xlu1 %v1640_v4, %s1899_s9  ;;  %v1625_v14 = vpack.i.bf16 %v570_v13, %v569_v12  ;;  %v660_v10 = vld [vmem:[#allocation6 + $0x4] sm:$0xf] }
 0x2ae   : > { %1621 = vrot.lane.b32.xlu0 %v1620_v11, %s1898_s8  ;;  %v758_v11 = vld [vmem:[#allocation2 + $0xc] sm:$0xf] }
 0x2b0   : > { %609 = vrot.lane.b32.xlu1 %v536_v27, %s1900_s10 }
 0x2b2   : > { %1626 = vrot.lane.b32.xlu0 %v1625_v14, %s1900_s10 }
 0x2b4   : > { %607 = vrot.lane.b32.xlu1 %v531_v25, %s1900_s10 }
 0x2b6   : > { %601 = vrot.lane.b32.xlu0 %v568_v15, %s1900_s10 }
 0x2ba   : > { %611 = vrot.lane.b32.xlu0 %v537_v28, %s1900_s10 }
 0x2be   : > { %665 = vperm.xlu0 %1589, %v1378_v18  }
 0x2c2   : > { %783 = vrot.lane.b32.xlu0 %v758_v11, %s1896_s6 }
 0x30d   : > { %v1612_v20 = vpop.permute.xlu1 %1611 }
 0x30e   : > { %v1614_v22 = vunpack.i.h.bf16 %v1612_v20  ;;  %v1613_v23 = vunpack.i.l.bf16 %v1612_v20 }
 0x310   : > { %v589_v31 = vsel %vm331_vm3, %v1613_v23, %v1614_v22 }
 0x311   : > { %v597_v39 = vsel %vm2110_vm6, %v589_v31, 0.0 }
 0x316   : > { %v1632_v21 = vpop.permute.xlu1 %1631 }
 0x317   : > { %v1634_v26 = vunpack.i.h.bf16 %v1632_v21  ;;  %v1633_v27 = vunpack.i.l.bf16 %v1632_v21 }
 0x319   : > { %v650_v32 = vsel %vm400_vm4, %v1633_v27, %v1634_v26 }
 0x31a   : > { %v1637_v24 = vpop.permute.xlu1 %1636  ;;  %v658_v43 = vsel %vm278_vm2, %v597_v39, %v650_v32 }
 0x31b   : > { %v1638_v30 = vunpack.i.l.bf16 %v1637_v24  ;;  %v1639_v54 = vunpack.i.h.bf16 %v1637_v24 }
 0x31c   : > { %v1617_v25 = vpop.permute.xlu0 %1616 }
 0x31d   : > { %v1618_v29 = vunpack.i.l.bf16 %v1617_v25  ;;  %v1619_v36 = vunpack.i.h.bf16 %v1617_v25  ;;  %v649_v42 = vsel %vm400_vm4, %v1638_v30, %v1633_v27 }
 0x31e   : > { %v1642_v17 = vpop.permute.xlu1 %1641 }
 0x31f   : > { %v588_v28 = vsel %vm331_vm3, %v1618_v29, %v1613_v23  ;;  %v1643_v44 = vunpack.i.l.bf16 %v1642_v17  ;;  %v1644_v56 = vunpack.i.h.bf16 %v1642_v17  ;;  %v805_v29 = vcombine.low %v758_v11, %v758_v11 }
 0x320   : > { %v1622_v34 = vpop.permute.xlu0 %1621  ;;  %v596_v35 = vsel %vm2105_vm5, %v588_v28, 0.0 }
 0x321   : > { %v1624_v37 = vunpack.i.h.bf16 %v1622_v34  ;;  %v1623_v38 = vunpack.i.l.bf16 %v1622_v34  ;;  %v657_v48 = vsel %vm278_vm2, %v596_v35, %v649_v42  ;;  %v652_v59 = vsel %vm400_vm4, %v1639_v54, %v1643_v44 }
 0x322   : > { %v610_v49 = vpop.permute.xlu1 %609  ;;  %v651_v63 = vsel %vm400_vm4, %v1644_v56, %v1639_v54 }
 0x323   : > { %v587_v45 = vsel %vm331_vm3, %v1619_v36, %v1623_v38  ;;  %v586_v47 = vsel %vm331_vm3, %v1624_v37, %v1619_v36 }
 0x324   : > { %v1627_v51 = vpop.permute.xlu0 %1626  ;;  %v1422_v52 = vpack.c.bf16 %v658_v43, %v587_v45  ;;  %v1425_v53 = vpack.c.bf16 %v657_v48, %v586_v47 }
 0x325   : > { %v1629_v57 = vunpack.i.h.bf16 %v1627_v51  ;;  %v1628_v58 = vunpack.i.l.bf16 %v1627_v51 }
 0x326   : > { %1424 = vmatprep.subr.msk.bf16.mxu1 %vm2126_vm9, %v1422_v52  ;;  %v608_v2 = vpop.permute.xlu1 %607 }
 0x327   : > { %v614_v60 = vsel %vm363_vm7, %v1628_v58, %v1629_v57  ;;  %1427 = vmatpush1.bf16.msk.msra.mxu1 %vm2135_vm10, %v1425_v53  ;;  %v615_v6 = vsel %vm363_vm7, %v608_v2, %v610_v49 }
 0x328   : > { %v1428_v61 = vpack.c.bf16 %v614_v60, %v652_v59  ;;  %v602_v62 = vpop.permute.xlu0 %601  ;;  %v623_v4 = vsel %vm2145_vm12, %v615_v6, 0.0 }
 0x329   : > { %v613_v1 = vsel %vm363_vm7, %v602_v62, %v1628_v58 }
 0x32a   : > { %v1431_v5 = vpack.c.bf16 %v613_v1, %v651_v63  ;;  %1430 = vmatprep.subr.msk.bf16.mxu1 %vm2156_vm13, %v1428_v61 }
 0x32c   : > { %v612_v7 = vpop.permute.xlu0 %611  ;;  %1433 = vmatpush1.bf16.msk.msra.mxu1 %vm2165_vm14, %v1431_v5 }
 0x32d   : > { %v616_v8 = vsel %vm363_vm7, %v610_v49, %v612_v7 }
 0x32e   : > { %v624_v9 = vsel %vm2139_vm11, %v616_v8, 0.0 }
 0x32f   : > { %1383 = vmatprep.subr.msk.mxu1 %vm278_vm2, %v624_v9 }
 0x330   : > { %1384 = vmatpush1.msk.msra.mxu1 %vm278_vm2, %v623_v4 }
 0x331   : > { %1385 = vmatmul.mubr.msk.f32.vlgmr.msra.gmra.mrb[0].mxu1 %vm418_vm15, %v660_v10 }
 0x332   : > { %1239 = vmatprep.mubr.f32.mxu1 %v1895_v0 }
 0x33d   : > { %v666_v12 = vpop.permute.xlu0 %665 }
 0x341   : > { %v784_v28 = vpop.permute.xlu0 %783 }
 0x404   : > { %v743_v13 = vpop.f32.mrb[0].mxu1 }
 0x405   : > { %v744_v14 = vadd.f32 %v743_v13, %v666_v12  ;;  %v745_v15 = vpop.f32.mrb[1].mxu1 }
 0x406   : > { %v746_v18 = vadd.f32 %v745_v15, %v666_v12 }
 0x408   : > { %v751_v20 = vcombine.low %v744_v14, %v746_v18 }
 0x40a   : > { %v2269_v21 = vadd.f32 %v751_v20, %v2033_v3 }
 0x40c   : > { %754 = vst [vmem:[#allocation2 + $0x4] sm:$0xff] %v2269_v21  ;;  %779 = vrot.lane.b32.xlu0 %v2269_v21, %s1896_s6  ;;  %v792_v0 = vcombine.low %v2269_v21, %v2269_v21  ;;  %v778_v23 = vcombine.high %v2269_v21, %v2269_v21  ;;  %v1660_v31 = vpack.i.bf16 %v805_v29, %v2269_v21 }
 0x40e   : > { %v1645_v22 = vpack.i.bf16 %v2269_v21, %v792_v0 }
 0x410   : > { %1646 = vrot.lane.b32.xlu1 %v1645_v22, %s1897_s7 }
 0x413   : > { %v2280_v24 = vld [vmem:[#allocation2] sm:$0xff]  ;;  %v756_v26 = vld [vmem:[#allocation2 + $0x8] sm:$0xf] }
 0x414   : > { %v763_v27 = vcombine.low %v2280_v24, %v2280_v24  ;;  %781 = vrot.lane.b32.xlu1 %v778_v23, %s1896_s6  ;;  %v764_v25 = vcombine.low %v756_v26, %v756_v26  ;;  %v761_v36 = vcombine.high %v2280_v24, %v2280_v24 }
 0x416   : > { %v1655_v30 = vpack.i.bf16 %v792_v0, %v763_v27  ;;  %v1650_v17 = vpack.i.bf16 %v764_v25, %v2280_v24 }
 0x418   : > { %1656 = vrot.lane.b32.xlu0 %v1655_v30, %s1897_s7  ;;  %1651 = vrot.lane.b32.xlu1 %v1650_v17, %s1897_s7 }
 0x41c   : > { %1661 = vrot.lane.b32.xlu1 %v1660_v31, %s1897_s7 }
 0x47e   : > { %v780_v39 = vpop.permute.xlu0 %779 }
 0x47f   : > { %v880_v12 = vrot.slane %v780_v39, 4 }
 0x482   : > { %v1647_v32 = vpop.permute.xlu1 %1646 }
 0x483   : > { %v1649_v34 = vunpack.i.h.bf16 %v1647_v32  ;;  %v1648_v35 = vunpack.i.l.bf16 %v1647_v32 }
 0x485   : > { %v797_v37 = vsel %vm260_vm1, %v1648_v35, %v1649_v34  ;;  %v803_v38 = vsel %vm278_vm2, %v756_v26, %v1649_v34  ;;  %v801_v58 = vsel %vm278_vm2, %v2280_v24, %v1648_v35 }
 0x486   : > { %v782_v42 = vpop.permute.xlu1 %781  ;;  %v802_v43 = vsel %vm278_vm2, %v761_v36, %v797_v37  ;;  %v879_v49 = vrot.slane %v803_v38, 4  ;;  %v877_v5 = vrot.slane %v801_v58, 4 }
 0x487   : > { %v785_v44 = vsel %vm275_vm0, %v780_v39, %v782_v42  ;;  %v786_v45 = vsel %vm275_vm0, %v782_v42, %v784_v28  ;;  %v878_v48 = vrot.slane %v802_v43, 4 }
 0x488   : > { %v1665_v47 = vpack.i.bf16 %v786_v45, %v785_v44  ;;  %v882_v51 = vrot.slane %v785_v44, 4  ;;  %v884_v60 = vrot.slane %v786_v45, 4  ;;  %v881_v20 = vsel %vm278_vm2, %v877_v5, %v880_v12 }
 0x489   : > { %v1685_v59 = vpack.i.bf16 %v879_v49, %v878_v48 }
 0x48a   : > { %v1657_v52 = vpop.permute.xlu0 %1656  ;;  %v1652_v53 = vpop.permute.xlu1 %1651  ;;  %1666 = vrot.lane.b32.xlu0 %v1665_v47, %s1898_s8  ;;  %v883_v63 = vsel %vm278_vm2, %v878_v48, %v882_v51  ;;  %v885_v15 = vsel %vm278_vm2, %v879_v49, %v884_v60 }
 0x48b   : > { %v1658_v54 = vunpack.i.l.bf16 %v1657_v52  ;;  %v1654_v56 = vunpack.i.h.bf16 %v1652_v53  ;;  %v1653_v57 = vunpack.i.l.bf16 %v1652_v53  ;;  %v1659_v6 = vunpack.i.h.bf16 %v1657_v52 }
 0x48c   : > { %v1690_v10 = vpack.i.bf16 %v883_v63, %v877_v5  ;;  %v1695_v0 = vpack.i.bf16 %v881_v20, %v885_v15 }
 0x48d   : > { %v771_v61 = vsel %vm260_vm1, %v1658_v54, %v1653_v57  ;;  %v772_v62 = vsel %vm260_vm1, %v1653_v57, %v1654_v56  ;;  %v789_v11 = vsel %vm278_vm2, %v756_v26, %v1654_v56  ;;  %v817_v25 = vsel %vm278_vm2, %v2280_v24, %v1659_v6 }
 0x48e   : > { %v1662_v1 = vpop.permute.xlu1 %1661  ;;  %1686 = vrot.lane.b32.xlu0 %v1685_v59, %s1899_s9  ;;  %v788_v2 = vsel %vm278_vm2, %v761_v36, %v772_v62  ;;  %v787_v4 = vsel %vm278_vm2, %v2280_v24, %v771_v61 }
 0x48f   : > { %v1664_v7 = vunpack.i.h.bf16 %v1662_v1  ;;  %v1663_v8 = vunpack.i.l.bf16 %v1662_v1  ;;  %v1670_v9 = vpack.i.bf16 %v788_v2, %v780_v39  ;;  %v1675_v18 = vpack.i.bf16 %v787_v4, %v789_v11 }
 0x491   : > { %v812_v13 = vsel %vm260_vm1, %v1659_v6, %v1663_v8  ;;  %v813_v14 = vsel %vm260_vm1, %v1663_v8, %v1664_v7  ;;  %1671 = vrot.lane.b32.xlu1 %v1670_v9, %s1898_s8 }
 0x492   : > { %1691 = vrot.lane.b32.xlu0 %v1690_v10, %s1899_s9  ;;  %v818_v22 = vsel %vm278_vm2, %v761_v36, %v812_v13  ;;  %v819_v23 = vsel %vm278_vm2, %v756_v26, %v813_v14  ;;  %v1386_v26 = vld [vmem:[%s2505_s2 + $0x8] sm:$0xf] }
 0x493   : > { %v1680_v27 = vpack.i.bf16 %v819_v23, %v818_v22 }
 0x495   : > { %1676 = vrot.lane.b32.xlu1 %v1675_v18, %s1898_s8  ;;  %v909_v18 = vld [vmem:[#allocation6 + $0x8] sm:$0xf] }
 0x496   : > { %1696 = vrot.lane.b32.xlu0 %v1695_v0, %s1899_s9  ;;  %v1007_v0 = vld [vmem:[#allocation3 + $0xc] sm:$0xf] }
 0x499   : > { %1681 = vrot.lane.b32.xlu1 %v1680_v27, %s1900_s10 }
 0x49a   : > { %858 = vrot.lane.b32.xlu0 %v785_v44, %s1900_s10 }
 0x49d   : > { %850 = vrot.lane.b32.xlu1 %v817_v25, %s1900_s10 }
 0x49e   : > { %856 = vrot.lane.b32.xlu0 %v780_v39, %s1900_s10 }
 0x4a1   : > { %860 = vrot.lane.b32.xlu1 %v786_v45, %s1900_s10 }
 0x4a5   : > { %914 = vperm.xlu1 %1700, %v1386_v26  }
 0x4a9   : > { %1032 = vrot.lane.b32.xlu1 %v1007_v0, %s1896_s6 }
 0x4fc   : > { %v1667_v29 = vpop.permute.xlu0 %1666 }
 0x4fd   : > { %v1669_v17 = vunpack.i.h.bf16 %v1667_v29  ;;  %v1668_v31 = vunpack.i.l.bf16 %v1667_v29 }
 0x4ff   : > { %v838_v36 = vsel %vm331_vm3, %v1668_v31, %v1669_v17  ;;  %v1054_v17 = vcombine.low %v1007_v0, %v1007_v0 }
 0x500   : > { %v1687_v30 = vpop.permute.xlu0 %1686  ;;  %v846_v45 = vsel %vm2110_vm6, %v838_v36, 0.0 }
 0x501   : > { %v1689_v28 = vunpack.i.h.bf16 %v1687_v30  ;;  %v1688_v32 = vunpack.i.l.bf16 %v1687_v30 }
 0x503   : > { %v1672_v34 = vpop.permute.xlu1 %1671  ;;  %v899_v38 = vsel %vm400_vm4, %v1688_v32, %v1689_v28 }
 0x504   : > { %v1673_v35 = vunpack.i.l.bf16 %v1672_v34  ;;  %v1692_v24 = vpop.permute.xlu0 %1691  ;;  %v1674_v47 = vunpack.i.h.bf16 %v1672_v34  ;;  %v907_v52 = vsel %vm278_vm2, %v846_v45, %v899_v38 }
 0x505   : > { %v1693_v37 = vunpack.i.l.bf16 %v1692_v24  ;;  %v1694_v61 = vunpack.i.h.bf16 %v1692_v24 }
 0x506   : > { %v837_v39 = vsel %vm331_vm3, %v1673_v35, %v1668_v31 }
 0x507   : > { %v845_v42 = vsel %vm2105_vm5, %v837_v39, 0.0  ;;  %v898_v43 = vsel %vm400_vm4, %v1693_v37, %v1688_v32  ;;  %v1677_v44 = vpop.permute.xlu1 %1676 }
 0x508   : > { %v1679_v48 = vunpack.i.h.bf16 %v1677_v44  ;;  %v1678_v49 = vunpack.i.l.bf16 %v1677_v44  ;;  %v1697_v51 = vpop.permute.xlu0 %1696  ;;  %v906_v56 = vsel %vm278_vm2, %v845_v42, %v898_v43 }
 0x509   : > { %v1698_v57 = vunpack.i.l.bf16 %v1697_v51  ;;  %v1699_v62 = vunpack.i.h.bf16 %v1697_v51 }
 0x50a   : > { %v835_v53 = vsel %vm331_vm3, %v1679_v48, %v1674_v47  ;;  %v836_v54 = vsel %vm331_vm3, %v1674_v47, %v1678_v49 }
 0x50b   : > { %v1434_v58 = vpack.c.bf16 %v907_v52, %v836_v54  ;;  %v1437_v59 = vpack.c.bf16 %v906_v56, %v835_v53  ;;  %v1682_v60 = vpop.permute.xlu1 %1681  ;;  %v901_v5 = vsel %vm400_vm4, %v1694_v61, %v1698_v57  ;;  %v900_v9 = vsel %vm400_vm4, %v1699_v62, %v1694_v61 }
 0x50c   : > { %v1684_v63 = vunpack.i.h.bf16 %v1682_v60  ;;  %v1683_v1 = vunpack.i.l.bf16 %v1682_v60  ;;  %v859_v2 = vpop.permute.xlu0 %858 }
 0x50d   : > { %1436 = vmatprep.subr.msk.bf16.mxu0 %vm2126_vm9, %v1434_v58 }
 0x50e   : > { %v863_v6 = vsel %vm363_vm7, %v1683_v1, %v1684_v63  ;;  %1439 = vmatpush1.bf16.msk.msra.mxu0 %vm2135_vm10, %v1437_v59 }
 0x50f   : > { %v1440_v7 = vpack.c.bf16 %v863_v6, %v901_v5  ;;  %v851_v8 = vpop.permute.xlu1 %850 }
 0x510   : > { %v862_v10 = vsel %vm363_vm7, %v851_v8, %v1683_v1  ;;  %v857_v4 = vpop.permute.xlu0 %856 }
 0x511   : > { %v1443_v11 = vpack.c.bf16 %v862_v10, %v900_v9  ;;  %1442 = vmatprep.subr.msk.bf16.mxu0 %vm2156_vm13, %v1440_v7  ;;  %v864_v12 = vsel %vm363_vm7, %v857_v4, %v859_v2 }
 0x512   : > { %v872_v20 = vsel %vm2145_vm12, %v864_v12, 0.0 }
 0x513   : > { %v861_v13 = vpop.permute.xlu1 %860  ;;  %1445 = vmatpush1.bf16.msk.msra.mxu0 %vm2165_vm14, %v1443_v11 }
 0x514   : > { %v865_v14 = vsel %vm363_vm7, %v859_v2, %v861_v13 }
 0x515   : > { %v873_v15 = vsel %vm2139_vm11, %v865_v14, 0.0 }
 0x516   : > { %1391 = vmatprep.subr.msk.mxu0 %vm278_vm2, %v873_v15 }
 0x517   : > { %1392 = vmatpush1.msk.msra.mxu0 %vm278_vm2, %v872_v20 }
 0x518   : > { %1393 = vmatmul.mubr.msk.f32.vlgmr.msra.gmra.mrb[2].mxu0 %vm418_vm15, %v909_v18 }
 0x524   : > { %v915_v22 = vpop.permute.xlu1 %914 }
 0x528   : > { %v1033_v43 = vpop.permute.xlu1 %1032 }
 0x5eb   : > { %v992_v23 = vpop.f32.mrb[2].mxu0 }
 0x5ec   : > { %v993_v27 = vadd.f32 %v992_v23, %v915_v22  ;;  %v994_v25 = vpop.f32.mrb[3].mxu0 }
 0x5ed   : > { %v995_v26 = vadd.f32 %v994_v25, %v915_v22 }
 0x5ee   : > { %v997_v29 = vmax.f32 %v993_v27, 0.0 }
 0x5ef   : > { %v998_v30 = vmax.f32 %v995_v26, 0.0 }
 0x5f0   : > { %v1776_v28 = vcombine.low %v997_v29, %v997_v29 }
 0x5f1   : > { %v1001_v31 = vcombine.low %v997_v29, %v998_v30  ;;  %v1777_v35 = vcombine.low %v998_v30, %v998_v30 }
 0x5f3   : > { %1003 = vst [vmem:[#allocation3 + $0x4] sm:$0xff] %v1001_v31  ;;  %1028 = vrot.lane.b32.xlu1 %v1001_v31, %s1896_s6  ;;  %v1716_v32 = vpack.i.bf16 %v1054_v17, %v1001_v31  ;;  %v1701_v34 = vpack.i.bf16 %v1001_v31, %v1776_v28 }
 0x5f5   : > { %1702 = vrot.lane.b32.xlu0 %v1701_v34, %s1897_s7 }
 0x5f9   : > { %1030 = vrot.lane.b32.xlu0 %v1777_v35, %s1896_s6  ;;  %s1274_s6 = sshll.u32 %s151_s5, 4  ;;  %s2454_s6 = int_to_ptr.vmem [resolvable:$true] %s1274_s6 }
 0x5fa   : > { %v2364_v24 = vld [vmem:[#allocation3] sm:$0xff]  ;;  %v1005_v36 = vld [vmem:[#allocation3 + $0x8] sm:$0xf]  ;;  %p1813_p13 = scmp.lt.s32.totalorder %s2454_s6, %s1811_s18 }
 0x5fb   : > { %v1012_v37 = vcombine.low %v2364_v24, %v2364_v24  ;;  %v1013_v38 = vcombine.low %v1005_v36, %v1005_v36  ;;  %v1010_v48 = vcombine.high %v2364_v24, %v2364_v24 }
 0x5fd   : > { %v1711_v39 = vpack.i.bf16 %v1776_v28, %v1012_v37  ;;  %v1706_v42 = vpack.i.bf16 %v1013_v38, %v2364_v24 }
 0x5ff   : > { %1712 = vrot.lane.b32.xlu1 %v1711_v39, %s1897_s7  ;;  %1707 = vrot.lane.b32.xlu0 %v1706_v42, %s1897_s7 }
 0x603   : > { %1717 = vrot.lane.b32.xlu0 %v1716_v32, %s1897_s7 }
 0x665   : > { %v1029_v52 = vpop.permute.xlu1 %1028 }
 0x666   : > { %v1129_v27 = vrot.slane %v1029_v52, 4 }
 0x667   : > { %v1703_v44 = vpop.permute.xlu0 %1702 }
 0x668   : > { %v1705_v45 = vunpack.i.h.bf16 %v1703_v44  ;;  %v1704_v47 = vunpack.i.l.bf16 %v1703_v44 }
 0x66a   : > { %v1046_v49 = vsel %vm260_vm1, %v1704_v47, %v1705_v45  ;;  %v1052_v51 = vsel %vm278_vm2, %v1005_v36, %v1705_v45  ;;  %v1050_v6 = vsel %vm278_vm2, %v2364_v24, %v1704_v47 }
 0x66b   : > { %v1031_v53 = vpop.permute.xlu0 %1030  ;;  %v1051_v54 = vsel %vm278_vm2, %v1010_v48, %v1046_v49  ;;  %v1128_v60 = vrot.slane %v1052_v51, 4  ;;  %v1126_v13 = vrot.slane %v1050_v6, 4 }
 0x66c   : > { %v1034_v56 = vsel %vm275_vm0, %v1029_v52, %v1031_v53  ;;  %v1035_v57 = vsel %vm275_vm0, %v1031_v53, %v1033_v43  ;;  %v1127_v59 = vrot.slane %v1051_v54, 4 }
 0x66d   : > { %v1721_v58 = vpack.i.bf16 %v1035_v57, %v1034_v56  ;;  %v1131_v61 = vrot.slane %v1034_v56, 4  ;;  %v1133_v8 = vrot.slane %v1035_v57, 4  ;;  %v1130_v17 = vsel %vm278_vm2, %v1126_v13, %v1129_v27  ;;  %v1158_v27 = vld [vmem:[#allocation6 + $0xc] sm:$0xf] }
 0x66e   : > { %v1741_v7 = vpack.i.bf16 %v1128_v60, %v1127_v59 }
 0x66f   : > { %1722 = vrot.lane.b32.xlu1 %v1721_v58, %s1898_s8  ;;  %v1132_v4 = vsel %vm278_vm2, %v1127_v59, %v1131_v61  ;;  %v1134_v29 = vsel %vm278_vm2, %v1128_v60, %v1133_v8 }
 0x670   : > { %v1746_v0 = vpack.i.bf16 %v1132_v4, %v1126_v13  ;;  %v1751_v31 = vpack.i.bf16 %v1130_v17, %v1134_v29 }
 0x671   : > { %v1713_v62 = vpop.permute.xlu1 %1712  ;;  %v1708_v63 = vpop.permute.xlu0 %1707 }
 0x672   : > { %v1714_v1 = vunpack.i.l.bf16 %v1713_v62  ;;  %v1710_v2 = vunpack.i.h.bf16 %v1708_v63  ;;  %v1709_v5 = vunpack.i.l.bf16 %v1708_v63  ;;  %v1715_v14 = vunpack.i.h.bf16 %v1713_v62 }
 0x673   : > { %1742 = vrot.lane.b32.xlu1 %v1741_v7, %s1899_s9 }
 0x674   : > { %v1020_v9 = vsel %vm260_vm1, %v1714_v1, %v1709_v5  ;;  %v1021_v10 = vsel %vm260_vm1, %v1709_v5, %v1710_v2  ;;  %v1038_v23 = vsel %vm278_vm2, %v1005_v36, %v1710_v2  ;;  %v1066_v35 = vsel %vm278_vm2, %v2364_v24, %v1715_v14 }
 0x675   : > { %v1718_v11 = vpop.permute.xlu0 %1717  ;;  %v1037_v12 = vsel %vm278_vm2, %v1010_v48, %v1021_v10  ;;  %v1036_v22 = vsel %vm278_vm2, %v2364_v24, %v1020_v9 }
 0x676   : > { %v1720_v15 = vunpack.i.h.bf16 %v1718_v11  ;;  %v1719_v18 = vunpack.i.l.bf16 %v1718_v11  ;;  %v1726_v20 = vpack.i.bf16 %v1037_v12, %v1029_v52  ;;  %v1731_v30 = vpack.i.bf16 %v1036_v22, %v1038_v23 }
 0x677   : > { %1747 = vrot.lane.b32.xlu1 %v1746_v0, %s1899_s9 }
 0x678   : > { %v1061_v25 = vsel %vm260_vm1, %v1715_v14, %v1719_v18  ;;  %v1062_v26 = vsel %vm260_vm1, %v1719_v18, %v1720_v15  ;;  %1727 = vrot.lane.b32.xlu0 %v1726_v20, %s1898_s8 }
 0x679   : > { %v1067_v28 = vsel %vm278_vm2, %v1010_v48, %v1061_v25  ;;  %v1068_v32 = vsel %vm278_vm2, %v1005_v36, %v1062_v26  ;;  %v1394_v36 = vld [vmem:[%s2505_s2 + $0xc] sm:$0xf] }
 0x67a   : > { %v1736_v34 = vpack.i.bf16 %v1068_v32, %v1067_v28 }
 0x67b   : > { %1752 = vrot.lane.b32.xlu1 %v1751_v31, %s1899_s9  ;;  %s2452_s9 = scalar_lea.hbm %s2506_s3, %s1409_s30 }
 0x67c   : > { %1732 = vrot.lane.b32.xlu0 %v1731_v30, %s1898_s8 }
 0x67f   : > { %1107 = vrot.lane.b32.xlu1 %v1034_v56, %s1900_s10 }
 0x680   : > { %1737 = vrot.lane.b32.xlu0 %v1736_v34, %s1900_s10 }
 0x683   : > { %1105 = vrot.lane.b32.xlu1 %v1029_v52, %s1900_s10 }
 0x684   : > { %1099 = vrot.lane.b32.xlu0 %v1066_v35, %s1900_s10 }
 0x688   : > { %1109 = vrot.lane.b32.xlu0 %v1035_v57, %s1900_s10  ;;  %s1806_s10 = scalar_lea.vmem %s2454_s6, 128 }
 0x689   : > { %p1807_p4 = scmp.ne.s32.totalorder %s2454_s6, %s1806_s10  ;;  %p1814_p1 = scmp.lt.s32.totalorder %s1812_s19, %s1806_s10 }
 0x68b   : > { %p1808_p10 = pnand %p1807_p4, %p2534_p8  ;;  %p1815_p3 = por %p1814_p1, %p1813_p13 }
 0x68c   : > { %1163 = vperm.xlu0 %1589, %v1394_v36  }
 0x68d   : > { %p1809_p11 = pneg %p1808_p10 }
 0x68f   : > { %p1816_p5 = pnand %p1815_p3, %p1809_p11 }
 0x6e1   : > { %v1723_v37 = vpop.permute.xlu1 %1722 }
 0x6e2   : > { %v1725_v39 = vunpack.i.h.bf16 %v1723_v37  ;;  %v1724_v42 = vunpack.i.l.bf16 %v1723_v37 }
 0x6e4   : > { %v1087_v48 = vsel %vm331_vm3, %v1724_v42, %v1725_v39 }
 0x6e5   : > { %v1743_v38 = vpop.permute.xlu1 %1742  ;;  %v1095_v57 = vsel %vm2110_vm6, %v1087_v48, 0.0 }
 0x6e6   : > { %v1745_v43 = vunpack.i.h.bf16 %v1743_v38  ;;  %v1744_v44 = vunpack.i.l.bf16 %v1743_v38 }
 0x6e8   : > { %v1148_v51 = vsel %vm400_vm4, %v1744_v44, %v1745_v43 }
 0x6e9   : > { %v1748_v24 = vpop.permute.xlu1 %1747  ;;  %v1156_v62 = vsel %vm278_vm2, %v1095_v57, %v1148_v51 }
 0x6ea   : > { %v1728_v45 = vpop.permute.xlu0 %1727  ;;  %v1749_v49 = vunpack.i.l.bf16 %v1748_v24  ;;  %v1750_v8 = vunpack.i.h.bf16 %v1748_v24 }
 0x6eb   : > { %v1729_v47 = vunpack.i.l.bf16 %v1728_v45  ;;  %v1730_v58 = vunpack.i.h.bf16 %v1728_v45 }
 0x6ec   : > { %v1147_v54 = vsel %vm400_vm4, %v1749_v49, %v1744_v44 }
 0x6ed   : > { %v1086_v52 = vsel %vm331_vm3, %v1729_v47, %v1724_v42  ;;  %v1753_v61 = vpop.permute.xlu1 %1752 }
 0x6ee   : > { %v1094_v53 = vsel %vm2105_vm5, %v1086_v52, 0.0  ;;  %v1733_v56 = vpop.permute.xlu0 %1732  ;;  %v1754_v16 = vunpack.i.l.bf16 %v1753_v61  ;;  %v1755_v9 = vunpack.i.h.bf16 %v1753_v61 }
 0x6ef   : > { %v1735_v59 = vunpack.i.h.bf16 %v1733_v56  ;;  %v1734_v60 = vunpack.i.l.bf16 %v1733_v56  ;;  %v1155_v2 = vsel %vm278_vm2, %v1094_v53, %v1147_v54 }
 0x6f0   : > { %v1150_v11 = vsel %vm400_vm4, %v1750_v8, %v1754_v16  ;;  %v1149_v15 = vsel %vm400_vm4, %v1755_v9, %v1750_v8 }
 0x6f1   : > { %v1084_v63 = vsel %vm331_vm3, %v1735_v59, %v1730_v58  ;;  %v1085_v1 = vsel %vm331_vm3, %v1730_v58, %v1734_v60  ;;  %v1108_v4 = vpop.permute.xlu1 %1107 }
 0x6f2   : > { %v1446_v5 = vpack.c.bf16 %v1156_v62, %v1085_v1  ;;  %v1449_v6 = vpack.c.bf16 %v1155_v2, %v1084_v63  ;;  %v1738_v7 = vpop.permute.xlu0 %1737 }
 0x6f3   : > { %v1740_v19 = vunpack.i.h.bf16 %v1738_v7  ;;  %v1739_v10 = vunpack.i.l.bf16 %v1738_v7 }
 0x6f4   : > { %1448 = vmatprep.subr.msk.bf16.mxu1 %vm2126_vm9, %v1446_v5 }
 0x6f5   : > { %v1112_v12 = vsel %vm363_vm7, %v1739_v10, %v1740_v19  ;;  %1451 = vmatpush1.bf16.msk.msra.mxu1 %vm2135_vm10, %v1449_v6  ;;  %v1106_v20 = vpop.permute.xlu1 %1105 }
 0x6f6   : > { %v1452_v13 = vpack.c.bf16 %v1112_v12, %v1150_v11  ;;  %v1100_v14 = vpop.permute.xlu0 %1099  ;;  %v1113_v33 = vsel %vm363_vm7, %v1106_v20, %v1108_v4 }
 0x6f7   : > { %v1111_v18 = vsel %vm363_vm7, %v1100_v14, %v1739_v10  ;;  %v1121_v25 = vsel %vm2145_vm12, %v1113_v33, 0.0 }
 0x6f8   : > { %v1455_v0 = vpack.c.bf16 %v1111_v18, %v1149_v15  ;;  %1454 = vmatprep.subr.msk.bf16.mxu1 %vm2156_vm13, %v1452_v13 }
 0x6fa   : > { %v1110_v22 = vpop.permute.xlu0 %1109  ;;  %1457 = vmatpush1.bf16.msk.msra.mxu1 %vm2165_vm14, %v1455_v0 }
 0x6fb   : > { %v1114_v40 = vsel %vm363_vm7, %v1108_v4, %v1110_v22 }
 0x6fc   : > { %v1122_v23 = vsel %vm2139_vm11, %v1114_v40, 0.0 }
 0x6fd   : > { %1399 = vmatprep.subr.msk.mxu1 %vm278_vm2, %v1122_v23 }
 0x6fe   : > { %1400 = vmatpush1.msk.msra.mxu1 %vm278_vm2, %v1121_v25 }
 0x6ff   : > { %1401 = vmatmul.mubr.msk.f32.vlgmr.msra.gmra.mrb[2].mxu1 %vm418_vm15, %v1158_v27 }
 0x70b   : > { %v1164_v50 = vpop.permute.xlu0 %1163 }
 0x7d2   : > { %v1241_v55 = vpop.f32.mrb[2].mxu1 }
 0x7d3   : > { %v1242_v26 = vadd.f32 %v1241_v55, %v1164_v50  ;;  %v1243_v29 = vpop.f32.mrb[3].mxu1 }
 0x7d4   : > { %v1244_v30 = vadd.f32 %v1243_v29, %v1164_v50 }
 0x7d6   : > { %v1249_v41 = vcombine.low %v1242_v26, %v1244_v30 }
 0x7d8   : > { %v1251_v46 = vadd.f32 %v1249_v41, %v2269_v21 }
 0x7da   : > { %1252 = vst [vmem:[#allocation2 + $0x4] sm:$0xff] %v1251_v46  ;;  %v1255_v17 = vadd.f32 %v1251_v46, %v2033_v3 }
 0x7dc   : > { %1256 = vst [vmem:[%s151_s5] sm:$0xff] %v1255_v17 }
 0x7dd   : > { %1819 = shalt.err (!%p1816_p5)
}
 0x7de   : > { %s1820_s28 = scalar_lea.hbm %s2452_s9, 128  ;;  %s1824_s21 = scalar_lea.hbm %s2506_s3, 256 }
 0x7df   : > { %p1821_p6 = scmp.ne.s32.totalorder %s2452_s9, %s1820_s28  ;;  %p1825_p12 = scmp.lt.u32.totalorder %s2452_s9, %s2506_s3 }
 0x7e0   : > { %p1826_p0 = scmp.lt.u32.totalorder %s1824_s21, %s1820_s28  ;;  %p1828_p4 = scmp.lt.u32.totalorder %s1820_s28, %s2452_s9 }
 0x7e1   : > { %p1822_p7 = pnand %p1821_p6, %p2534_p8 }
 0x7e2   : > { %p1827_p2 = por %p1826_p0, %p1825_p12 }
 0x7e3   : > { %p1823_p9 = pneg %p1822_p7 }
 0x7e4   : > { %p1829_p10 = por %p1828_p4, %p1827_p2 }
 0x7e6   : > { %p1830_p11 = pnand %p1829_p10, %p1823_p9 }
 0x7e8   : > { %1833 = shalt.err (!%p1830_p11)
}
 0x7e9   : > { %1462 = dma.vmem_to_hbm [thread:$0]  (%p2534_p8), %s2454_s6, 128, %s2452_s9, %s1258_s15  }
 0x7ea PF: > { %p1474_p13 = scmp.ge.s32.totalorder %s1890_s17, 2  ;;  %s1286_s27 = sand.u32 1, %s1870_s12  }
 0x7eb   : > { %p2535_p1 = scmp.ne.s32.totalorder %s2512_s24, 0  ;;  %s1287_s29 = scalar_lea.sflag [#allocation8], %s1286_s27 }
 0x7ed   : > { %p1469_p3 = pnand %p1474_p13, %p2535_p1 }
 0x7ef   : > { %1865 = dma.done.wait (!%p1469_p3), %s1287_s29, 128  }
 0x7f0   : > { %1867 = vsyncadd (!%p1469_p3), %s1287_s29, 4294967168  ;;  %s17_s17 = sadd.s32 1, %s1890_s17   ;;  %s2536_s12 = smov %s1874_s13 }
 0x7f1   : > { %p14_p5 = scmp.ge.s32.totalorder %s17_s17, 4   ;;  %s2537_s13 = smov %s1878_s14 }
 0x7f2   : > { %s2538_s14 = smov %s1977_s25  ;;  %s2539_s15 = smov %s1886_s16 }
 0x7f3   : > { %s2540_s16 = smov %s2542_s20  ;;  %16 = sbr.rel (!%p14_p5) target bundleno = 5 (0x5), region = 115 }
 0x7fa   :  { %1292 = vsyncpa [#allocation7], 1 }
 0x7fb   :  { %1294 = vsyncpa [#allocation7 + $0x1], 1 }
 0x7fc   :  { %1295 = vsyncpa [#allocation8], 1 }
 0x7fd   :  { %1297 = vsyncpa [#allocation8 + $0x1], 1 }
 0x7fe   :  { %1298 = vsyncmov [#allocation5] }
 0x801   :  { %s1299_s22 = vpop.sfrf %1298 }
 0x802   :  { %p1407_p8 = scmp.ne.s32.totalorder %s1299_s22, 0 }
 0x804   :  { %1303 = shalt.err (%p1407_p8)  }

</bundles_post_ra>
